<compile_context>
chip_gen: v7x
topology: tpu7x:2x2x1
jax: 0.10.0
libtpu: 0.0.40
codegen_flags: <defaults>
</compile_context>

<pallas_src>
import jax
import jax.numpy as jnp
import numpy as np
from jax.experimental import pallas as pl
from jax.experimental.pallas import tpu as pltpu


def _cfc_kernel(x_ref, h0_ref,
                wbx_ref, wbh_ref, bb_ref,
                wh_ref, bh_ref,
                y_ref, hT_ref):
    """Whole-sequence CfC forward; the T recurrence runs inside the kernel."""
    T = x_ref.shape[0]
    H = hT_ref.shape[-1]

    # Hoist all weight loads out of the time loop.
    wbx = wbx_ref[...]      # (I, U)   bf16  backbone weight (input part)
    wbh = wbh_ref[...]      # (H, U)   bf16  backbone weight (hidden part)
    bb_b = bb_ref[...]      # (1, U)   f32   backbone bias
    wh = wh_ref[...]        # (U, 4H)  bf16  fused [ff1 | ff2 | time_a | time_b]
    bh_b = bh_ref[...]      # (1, 4H)  f32   fused head biases

    def step(t, h):
        x = x_ref[t]                                            # (B, I) bf16
        # backbone Linear(I+H -> U) on concat([x, h]) == x@Wx + h@Wh + b
        z = (jnp.dot(x, wbx, preferred_element_type=jnp.float32)
             + jnp.dot(h.astype(jnp.bfloat16), wbh,
                       preferred_element_type=jnp.float32)
             + bb_b)
        bb_act = 1.7159 * jnp.tanh(0.666 * z)                   # lecun_tanh

        # One lane-dense (B, 4H=128) head matmul instead of four (B, 32) ones.
        heads = (jnp.dot(bb_act.astype(jnp.bfloat16), wh,
                         preferred_element_type=jnp.float32) + bh_b)
        ff1 = jnp.tanh(heads[:, 0:H])
        ff2 = jnp.tanh(heads[:, H:2 * H])
        t_a = heads[:, 2 * H:3 * H]
        t_b = heads[:, 3 * H:4 * H]

        ts = 1.0   # timespans=None in the PyTorch forward -> ts == 1.0
        t_interp = jax.nn.sigmoid(t_a * ts + t_b)
        new_h = ff1 * (1.0 - t_interp) + t_interp * ff2         # mode="default"

        y_ref[t] = new_h.astype(y_ref.dtype)                    # return_sequences
        return new_h

    h_final = jax.lax.fori_loop(0, T, step, h0_ref[...], unroll=True)
    hT_ref[...] = h_final.astype(hT_ref.dtype)                  # final hidden state


def cfc_forward(x_btf, h0, params):
    """x_btf: (B, T, I) batch-first. Returns (readout (B,T,H), h_state (B,H))."""
    B, T, I = x_btf.shape
    H = h0.shape[-1]
    U = params["wbx"].shape[1]

    # Pad batch to sublane granularity (8) so MXU rows / vreg sublanes aren't
    # mostly padding. Padded rows see zero inputs and are sliced off below.
    Bp = max(8, ((B + 7) // 8) * 8)

    x_tbf = jnp.transpose(x_btf, (1, 0, 2))                       # time-major
    x_tbf = jnp.pad(x_tbf, ((0, 0), (0, Bp - B), (0, 0))).astype(jnp.bfloat16)
    h0_p = jnp.pad(h0, ((0, Bp - B), (0, 0))).astype(jnp.float32)

    # bf16 MXU operands; biases stay f32 (added post-accumulation).
    wbx = params["wbx"].astype(jnp.bfloat16)
    wbh = params["wbh"].astype(jnp.bfloat16)
    wh = params["wh"].astype(jnp.bfloat16)
    bb_b = params["bb"].astype(jnp.float32)
    bh_b = params["bh"].astype(jnp.float32)

    def full(shape):
        return pl.BlockSpec(shape, lambda i, _n=len(shape): (0,) * _n)

    y_tbh, hT = pl.pallas_call(
        _cfc_kernel,
        out_shape=[jax.ShapeDtypeStruct((T, Bp, H), jnp.float32),
                   jax.ShapeDtypeStruct((Bp, H), jnp.float32)],
        grid_spec=pltpu.PrefetchScalarGridSpec(
            num_scalar_prefetch=0,
            grid=(1,),                      # whole recurrence in one grid step
            in_specs=[full((T, Bp, I)),     # entire input sequence, one DMA
                      full((Bp, H)),        # h0
                      full((I, U)), full((H, U)), full((1, U)),       # backbone
                      full((U, 4 * H)), full((1, 4 * H))],            # fused heads
            out_specs=[full((T, Bp, H)),    # full output sequence, one DMA
                       full((Bp, H))],      # final hidden state
        ),
        compiler_params=pltpu.CompilerParams(
            dimension_semantics=("arbitrary",)),
    )(x_tbf, h0_p, wbx, wbh, bb_b, wh, bh_b)

    return jnp.transpose(y_tbh, (1, 0, 2))[:B], hT[:B]


def init_params(key, I, H, U):
    """Deterministic init matching the module shapes (xavier_uniform on 2-D weights)."""
    ks = jax.random.split(key, 10)

    def xavier(k, out_f, in_f):
        lim = float(np.sqrt(6.0 / (in_f + out_f)))
        return jax.random.uniform(k, (out_f, in_f), jnp.float32, -lim, lim)

    def bias(k, out_f, in_f):
        lim = float(1.0 / np.sqrt(in_f))
        return jax.random.uniform(k, (out_f,), jnp.float32, -lim, lim)

    Wb = xavier(ks[0], U, I + H); bb_ = bias(ks[1], U, I + H)   # backbone Linear(I+H, U)
    W1 = xavier(ks[2], H, U); b1 = bias(ks[3], H, U)            # ff1
    W2 = xavier(ks[4], H, U); b2 = bias(ks[5], H, U)            # ff2
    Wta = xavier(ks[6], H, U); bta = bias(ks[7], H, U)          # time_a
    Wtb = xavier(ks[8], H, U); btb = bias(ks[9], H, U)          # time_b

    WbT = Wb.T                                                  # (I+H, U)
    Wheads = jnp.concatenate([W1.T, W2.T, Wta.T, Wtb.T], axis=1)   # (U, 4H) fused
    bheads = jnp.concatenate([b1, b2, bta, btb]).reshape(1, 4 * H)
    return {"wbx": WbT[:I], "wbh": WbT[I:], "bb": bb_.reshape(1, U),
            "wh": Wheads, "bh": bheads}


def _step_math(h, x_dotted_z, params, H):
    bb = 1.7159 * jnp.tanh(0.666 * x_dotted_z)
    return bb


def cfc_reference_bf16(x_btf, h0, params):
    """Pure-JAX reference mirroring the kernel's bf16 MXU operands exactly."""
    H = h0.shape[-1]
    wbx = params["wbx"].astype(jnp.bfloat16)
    wbh = params["wbh"].astype(jnp.bfloat16)
    wh = params["wh"].astype(jnp.bfloat16)

    def step(h, x):
        z = (jnp.dot(x.astype(jnp.bfloat16), wbx, preferred_element_type=jnp.float32)
             + jnp.dot(h.astype(jnp.bfloat16), wbh, preferred_element_type=jnp.float32)
             + params["bb"])
        bb = 1.7159 * jnp.tanh(0.666 * z)
        heads = (jnp.dot(bb.astype(jnp.bfloat16), wh, preferred_element_type=jnp.float32)
                 + params["bh"])
        ff1 = jnp.tanh(heads[:, :H]); ff2 = jnp.tanh(heads[:, H:2 * H])
        t_interp = jax.nn.sigmoid(heads[:, 2 * H:3 * H] * 1.0 + heads[:, 3 * H:])
        new_h = ff1 * (1.0 - t_interp) + t_interp * ff2
        return new_h, new_h

    hT, ys = jax.lax.scan(step, h0, jnp.transpose(x_btf, (1, 0, 2)))
    return jnp.transpose(ys, (1, 0, 2)), hT


def cfc_reference_f32(x_btf, h0, params):
    """Pure-JAX f32 reference of the original module math."""
    H = h0.shape[-1]

    def step(h, x):
        z = x @ params["wbx"] + h @ params["wbh"] + params["bb"]
        bb = 1.7159 * jnp.tanh(0.666 * z)
        heads = bb @ params["wh"] + params["bh"]
        ff1 = jnp.tanh(heads[:, :H]); ff2 = jnp.tanh(heads[:, H:2 * H])
        t_interp = jax.nn.sigmoid(heads[:, 2 * H:3 * H] * 1.0 + heads[:, 3 * H:])
        new_h = ff1 * (1.0 - t_interp) + t_interp * ff2
        return new_h, new_h

    hT, ys = jax.lax.scan(step, h0, jnp.transpose(x_btf, (1, 0, 2)))
    return jnp.transpose(ys, (1, 0, 2)), hT


if __name__ == "__main__":
    B, T, I, H, U = 2, 8, 8, 32, 128   # batch, seq, input_size, units, backbone_units

    key = jax.random.PRNGKey(0)
    k_x, k_p = jax.random.split(key)
    x = jax.random.normal(k_x, (B, T, I), jnp.float32)   # batch-first input, like PyTorch
    h0 = jnp.zeros((B, H), jnp.float32)                  # hx=None -> zeros
    params = init_params(k_p, I, H, U)

    readout, h_state = jax.block_until_ready(cfc_forward(x, h0, params))
    assert readout.shape == (B, T, H) and h_state.shape == (B, H)

    # Correctness of the kernel logic: compare against a reference that uses the
    # same bf16 MXU operands (f32 accumulate / elementwise).
    ref_y, ref_h = cfc_reference_bf16(x, h0, params)
    np.testing.assert_allclose(np.asarray(readout), np.asarray(ref_y), rtol=1e-2, atol=1e-2)
    np.testing.assert_allclose(np.asarray(h_state), np.asarray(ref_h), rtol=1e-2, atol=1e-2)

    # Sanity vs. the original full-f32 module math (loosened for bf16 weight /
    # activation quantization accumulated over the recurrence).
    f32_y, f32_h = cfc_reference_f32(x, h0, params)
    np.testing.assert_allclose(np.asarray(readout), np.asarray(f32_y), rtol=1.5e-1, atol=1.5e-1)
    np.testing.assert_allclose(np.asarray(h_state), np.asarray(f32_h), rtol=1.5e-1, atol=1.5e-1)

    print("KERNEL_OK")
</pallas_src>

<mosaic_0001>
module attributes {stable_mosaic.version = 11 : i64} {
  func.func @_cfc_kernel(%arg0: i32, %arg1: memref<8x8x8xbf16, #tpu.memory_space<vmem>>, %arg2: memref<8x32xf32, #tpu.memory_space<vmem>>, %arg3: memref<8x128xbf16, #tpu.memory_space<vmem>>, %arg4: memref<32x128xbf16, #tpu.memory_space<vmem>>, %arg5: memref<1x128xf32, #tpu.memory_space<vmem>>, %arg6: memref<128x128xbf16, #tpu.memory_space<vmem>>, %arg7: memref<1x128xf32, #tpu.memory_space<vmem>>, %arg8: memref<8x8x32xf32, #tpu.memory_space<vmem>>, %arg9: memref<8x32xf32, #tpu.memory_space<vmem>>) attributes {dimension_semantics = [#tpu.dimension_semantics<arbitrary>], iteration_bounds = array<i64: 1>, scalar_prefetch = 0 : i64, scratch_operands = 0 : i64, tpu.core_type = #tpu.core_type<tc>, window_params = [{pipeline_mode = #tpu.pipeline_mode<synchronous>, transform_indices = @transform_0, window_bounds = array<i64: 8, 8, 8>}, {pipeline_mode = #tpu.pipeline_mode<synchronous>, transform_indices = @transform_1, window_bounds = array<i64: 8, 32>}, {pipeline_mode = #tpu.pipeline_mode<synchronous>, transform_indices = @transform_2, window_bounds = array<i64: 8, 128>}, {pipeline_mode = #tpu.pipeline_mode<synchronous>, transform_indices = @transform_3, window_bounds = array<i64: 32, 128>}, {pipeline_mode = #tpu.pipeline_mode<synchronous>, transform_indices = @transform_4, window_bounds = array<i64: 1, 128>}, {pipeline_mode = #tpu.pipeline_mode<synchronous>, transform_indices = @transform_5, window_bounds = array<i64: 128, 128>}, {pipeline_mode = #tpu.pipeline_mode<synchronous>, transform_indices = @transform_6, window_bounds = array<i64: 1, 128>}, {pipeline_mode = #tpu.pipeline_mode<synchronous>, transform_indices = @transform_7, window_bounds = array<i64: 8, 8, 32>}, {pipeline_mode = #tpu.pipeline_mode<synchronous>, transform_indices = @transform_8, window_bounds = array<i64: 8, 32>}]} {
    %c0 = arith.constant 0 : index
    %c0_0 = arith.constant 0 : index
    %0 = vector.load %arg3[%c0, %c0_0] : memref<8x128xbf16, #tpu.memory_space<vmem>>, vector<8x128xbf16>
    %c0_1 = arith.constant 0 : index
    %c0_2 = arith.constant 0 : index
    %1 = vector.load %arg4[%c0_1, %c0_2] : memref<32x128xbf16, #tpu.memory_space<vmem>>, vector<32x128xbf16>
    %c0_3 = arith.constant 0 : index
    %c0_4 = arith.constant 0 : index
    %2 = vector.load %arg5[%c0_3, %c0_4] : memref<1x128xf32, #tpu.memory_space<vmem>>, vector<1x128xf32>
    %c0_5 = arith.constant 0 : index
    %c0_6 = arith.constant 0 : index
    %3 = vector.load %arg6[%c0_5, %c0_6] : memref<128x128xbf16, #tpu.memory_space<vmem>>, vector<128x128xbf16>
    %c0_7 = arith.constant 0 : index
    %c0_8 = arith.constant 0 : index
    %4 = vector.load %arg7[%c0_7, %c0_8] : memref<1x128xf32, #tpu.memory_space<vmem>>, vector<1x128xf32>
    %c0_9 = arith.constant 0 : index
    %c0_10 = arith.constant 0 : index
    %5 = vector.load %arg2[%c0_9, %c0_10] : memref<8x32xf32, #tpu.memory_space<vmem>>, vector<8x32xf32>
    %c0_i32 = arith.constant 0 : i32
    %6 = arith.index_cast %c0_i32 : i32 to index
    %c0_11 = arith.constant 0 : index
    %c0_12 = arith.constant 0 : index
    %7 = vector.load %arg1[%6, %c0_11, %c0_12] : memref<8x8x8xbf16, #tpu.memory_space<vmem>>, vector<1x8x8xbf16>
    %8 = vector.shape_cast %7 : vector<1x8x8xbf16> to vector<8x8xbf16>
    %cst = arith.constant dense<0.000000e+00> : vector<8x128xf32>
    %9 = tpu.matmul %8, %0, %cst {dimension_numbers = #tpu.dot_dimension_numbers<[1], [0], [0], [1], [0, 0, 1, 1], [], []>} : vector<8x8xbf16>, vector<8x128xbf16>, vector<8x128xf32> -> vector<8x128xf32>
    %10 = arith.truncf %5 : vector<8x32xf32> to vector<8x32xbf16>
    %cst_13 = arith.constant dense<0.000000e+00> : vector<8x128xf32>
    %11 = tpu.matmul %10, %1, %cst_13 {dimension_numbers = #tpu.dot_dimension_numbers<[1], [0], [0], [1], [0, 0, 1, 1], [], []>} : vector<8x32xbf16>, vector<32x128xbf16>, vector<8x128xf32> -> vector<8x128xf32>
    %12 = arith.addf %9, %11 : vector<8x128xf32>
    %13 = vector.broadcast %2 : vector<1x128xf32> to vector<8x128xf32>
    %14 = arith.addf %12, %13 : vector<8x128xf32>
    %cst_14 = arith.constant 6.660000e-01 : f32
    %15 = vector.broadcast %cst_14 : f32 to vector<8x128xf32>
    %16 = arith.mulf %15, %14 : vector<8x128xf32>
    %17 = math.tanh %16 : vector<8x128xf32>
    %cst_15 = arith.constant 1.715900e+00 : f32
    %18 = vector.broadcast %cst_15 : f32 to vector<8x128xf32>
    %19 = arith.mulf %18, %17 : vector<8x128xf32>
    %20 = arith.truncf %19 : vector<8x128xf32> to vector<8x128xbf16>
    %cst_16 = arith.constant dense<0.000000e+00> : vector<8x128xf32>
    %21 = tpu.matmul %20, %3, %cst_16 {dimension_numbers = #tpu.dot_dimension_numbers<[1], [0], [0], [1], [0, 0, 1, 1], [], []>} : vector<8x128xbf16>, vector<128x128xbf16>, vector<8x128xf32> -> vector<8x128xf32>
    %22 = vector.broadcast %4 : vector<1x128xf32> to vector<8x128xf32>
    %23 = arith.addf %21, %22 : vector<8x128xf32>
    %24 = vector.extract_strided_slice %23 {offsets = [0, 0], sizes = [8, 32], strides = [1, 1]} : vector<8x128xf32> to vector<8x32xf32>
    %25 = math.tanh %24 : vector<8x32xf32>
    %26 = vector.extract_strided_slice %23 {offsets = [0, 32], sizes = [8, 32], strides = [1, 1]} : vector<8x128xf32> to vector<8x32xf32>
    %27 = math.tanh %26 : vector<8x32xf32>
    %28 = vector.extract_strided_slice %23 {offsets = [0, 64], sizes = [8, 32], strides = [1, 1]} : vector<8x128xf32> to vector<8x32xf32>
    %29 = vector.extract_strided_slice %23 {offsets = [0, 96], sizes = [8, 32], strides = [1, 1]} : vector<8x128xf32> to vector<8x32xf32>
    %cst_17 = arith.constant 1.000000e+00 : f32
    %30 = vector.broadcast %cst_17 : f32 to vector<8x32xf32>
    %31 = arith.mulf %28, %30 : vector<8x32xf32>
    %32 = arith.addf %31, %29 : vector<8x32xf32>
    %33 = arith.negf %32 : vector<8x32xf32>
    %34 = math.exp %33 : vector<8x32xf32>
    %cst_18 = arith.constant 1.000000e+00 : f32
    %35 = vector.broadcast %cst_18 : f32 to vector<8x32xf32>
    %36 = arith.addf %35, %34 : vector<8x32xf32>
    %37 = arith.divf %35, %36 : vector<8x32xf32>
    %cst_19 = arith.constant 1.000000e+00 : f32
    %38 = vector.broadcast %cst_19 : f32 to vector<8x32xf32>
    %39 = arith.subf %38, %37 : vector<8x32xf32>
    %40 = arith.mulf %25, %39 : vector<8x32xf32>
    %41 = arith.mulf %37, %27 : vector<8x32xf32>
    %42 = arith.addf %40, %41 : vector<8x32xf32>
    %43 = arith.index_cast %c0_i32 : i32 to index
    %c0_20 = arith.constant 0 : index
    %c0_21 = arith.constant 0 : index
    %44 = vector.load %arg8[%43, %c0_20, %c0_21] : memref<8x8x32xf32, #tpu.memory_space<vmem>>, vector<1x8x32xf32>
    %45 = vector.shape_cast %44 : vector<1x8x32xf32> to vector<8x32xf32>
    %46 = vector.shape_cast %42 : vector<8x32xf32> to vector<1x8x32xf32>
    tpu.vector_store %arg8[%43, %c0_20, %c0_21], %46 {strides = array<i32>} : memref<8x8x32xf32, #tpu.memory_space<vmem>>, vector<1x8x32xf32>,
    %c1_i32 = arith.constant 1 : i32
    %47 = arith.index_cast %c1_i32 : i32 to index
    %c0_22 = arith.constant 0 : index
    %c0_23 = arith.constant 0 : index
    %48 = vector.load %arg1[%47, %c0_22, %c0_23] : memref<8x8x8xbf16, #tpu.memory_space<vmem>>, vector<1x8x8xbf16>
    %49 = vector.shape_cast %48 : vector<1x8x8xbf16> to vector<8x8xbf16>
    %cst_24 = arith.constant dense<0.000000e+00> : vector<8x128xf32>
    %50 = tpu.matmul %49, %0, %cst_24 {dimension_numbers = #tpu.dot_dimension_numbers<[1], [0], [0], [1], [0, 0, 1, 1], [], []>} : vector<8x8xbf16>, vector<8x128xbf16>, vector<8x128xf32> -> vector<8x128xf32>
    %51 = arith.truncf %42 : vector<8x32xf32> to vector<8x32xbf16>
    %cst_25 = arith.constant dense<0.000000e+00> : vector<8x128xf32>
    %52 = tpu.matmul %51, %1, %cst_25 {dimension_numbers = #tpu.dot_dimension_numbers<[1], [0], [0], [1], [0, 0, 1, 1], [], []>} : vector<8x32xbf16>, vector<32x128xbf16>, vector<8x128xf32> -> vector<8x128xf32>
    %53 = arith.addf %50, %52 : vector<8x128xf32>
    %54 = vector.broadcast %2 : vector<1x128xf32> to vector<8x128xf32>
    %55 = arith.addf %53, %54 : vector<8x128xf32>
    %cst_26 = arith.constant 6.660000e-01 : f32
    %56 = vector.broadcast %cst_26 : f32 to vector<8x128xf32>
    %57 = arith.mulf %56, %55 : vector<8x128xf32>
    %58 = math.tanh %57 : vector<8x128xf32>
    %cst_27 = arith.constant 1.715900e+00 : f32
    %59 = vector.broadcast %cst_27 : f32 to vector<8x128xf32>
    %60 = arith.mulf %59, %58 : vector<8x128xf32>
    %61 = arith.truncf %60 : vector<8x128xf32> to vector<8x128xbf16>
    %cst_28 = arith.constant dense<0.000000e+00> : vector<8x128xf32>
    %62 = tpu.matmul %61, %3, %cst_28 {dimension_numbers = #tpu.dot_dimension_numbers<[1], [0], [0], [1], [0, 0, 1, 1], [], []>} : vector<8x128xbf16>, vector<128x128xbf16>, vector<8x128xf32> -> vector<8x128xf32>
    %63 = vector.broadcast %4 : vector<1x128xf32> to vector<8x128xf32>
    %64 = arith.addf %62, %63 : vector<8x128xf32>
    %65 = vector.extract_strided_slice %64 {offsets = [0, 0], sizes = [8, 32], strides = [1, 1]} : vector<8x128xf32> to vector<8x32xf32>
    %66 = math.tanh %65 : vector<8x32xf32>
    %67 = vector.extract_strided_slice %64 {offsets = [0, 32], sizes = [8, 32], strides = [1, 1]} : vector<8x128xf32> to vector<8x32xf32>
    %68 = math.tanh %67 : vector<8x32xf32>
    %69 = vector.extract_strided_slice %64 {offsets = [0, 64], sizes = [8, 32], strides = [1, 1]} : vector<8x128xf32> to vector<8x32xf32>
    %70 = vector.extract_strided_slice %64 {offsets = [0, 96], sizes = [8, 32], strides = [1, 1]} : vector<8x128xf32> to vector<8x32xf32>
    %cst_29 = arith.constant 1.000000e+00 : f32
    %71 = vector.broadcast %cst_29 : f32 to vector<8x32xf32>
    %72 = arith.mulf %69, %71 : vector<8x32xf32>
    %73 = arith.addf %72, %70 : vector<8x32xf32>
    %74 = arith.negf %73 : vector<8x32xf32>
    %75 = math.exp %74 : vector<8x32xf32>
    %cst_30 = arith.constant 1.000000e+00 : f32
    %76 = vector.broadcast %cst_30 : f32 to vector<8x32xf32>
    %77 = arith.addf %76, %75 : vector<8x32xf32>
    %78 = arith.divf %76, %77 : vector<8x32xf32>
    %cst_31 = arith.constant 1.000000e+00 : f32
    %79 = vector.broadcast %cst_31 : f32 to vector<8x32xf32>
    %80 = arith.subf %79, %78 : vector<8x32xf32>
    %81 = arith.mulf %66, %80 : vector<8x32xf32>
    %82 = arith.mulf %78, %68 : vector<8x32xf32>
    %83 = arith.addf %81, %82 : vector<8x32xf32>
    %84 = arith.index_cast %c1_i32 : i32 to index
    %c0_32 = arith.constant 0 : index
    %c0_33 = arith.constant 0 : index
    %85 = vector.load %arg8[%84, %c0_32, %c0_33] : memref<8x8x32xf32, #tpu.memory_space<vmem>>, vector<1x8x32xf32>
    %86 = vector.shape_cast %85 : vector<1x8x32xf32> to vector<8x32xf32>
    %87 = vector.shape_cast %83 : vector<8x32xf32> to vector<1x8x32xf32>
    tpu.vector_store %arg8[%84, %c0_32, %c0_33], %87 {strides = array<i32>} : memref<8x8x32xf32, #tpu.memory_space<vmem>>, vector<1x8x32xf32>,
    %c2_i32 = arith.constant 2 : i32
    %88 = arith.index_cast %c2_i32 : i32 to index
    %c0_34 = arith.constant 0 : index
    %c0_35 = arith.constant 0 : index
    %89 = vector.load %arg1[%88, %c0_34, %c0_35] : memref<8x8x8xbf16, #tpu.memory_space<vmem>>, vector<1x8x8xbf16>
    %90 = vector.shape_cast %89 : vector<1x8x8xbf16> to vector<8x8xbf16>
    %cst_36 = arith.constant dense<0.000000e+00> : vector<8x128xf32>
    %91 = tpu.matmul %90, %0, %cst_36 {dimension_numbers = #tpu.dot_dimension_numbers<[1], [0], [0], [1], [0, 0, 1, 1], [], []>} : vector<8x8xbf16>, vector<8x128xbf16>, vector<8x128xf32> -> vector<8x128xf32>
    %92 = arith.truncf %83 : vector<8x32xf32> to vector<8x32xbf16>
    %cst_37 = arith.constant dense<0.000000e+00> : vector<8x128xf32>
    %93 = tpu.matmul %92, %1, %cst_37 {dimension_numbers = #tpu.dot_dimension_numbers<[1], [0], [0], [1], [0, 0, 1, 1], [], []>} : vector<8x32xbf16>, vector<32x128xbf16>, vector<8x128xf32> -> vector<8x128xf32>
    %94 = arith.addf %91, %93 : vector<8x128xf32>
    %95 = vector.broadcast %2 : vector<1x128xf32> to vector<8x128xf32>
    %96 = arith.addf %94, %95 : vector<8x128xf32>
    %cst_38 = arith.constant 6.660000e-01 : f32
    %97 = vector.broadcast %cst_38 : f32 to vector<8x128xf32>
    %98 = arith.mulf %97, %96 : vector<8x128xf32>
    %99 = math.tanh %98 : vector<8x128xf32>
    %cst_39 = arith.constant 1.715900e+00 : f32
    %100 = vector.broadcast %cst_39 : f32 to vector<8x128xf32>
    %101 = arith.mulf %100, %99 : vector<8x128xf32>
    %102 = arith.truncf %101 : vector<8x128xf32> to vector<8x128xbf16>
    %cst_40 = arith.constant dense<0.000000e+00> : vector<8x128xf32>
    %103 = tpu.matmul %102, %3, %cst_40 {dimension_numbers = #tpu.dot_dimension_numbers<[1], [0], [0], [1], [0, 0, 1, 1], [], []>} : vector<8x128xbf16>, vector<128x128xbf16>, vector<8x128xf32> -> vector<8x128xf32>
    %104 = vector.broadcast %4 : vector<1x128xf32> to vector<8x128xf32>
    %105 = arith.addf %103, %104 : vector<8x128xf32>
    %106 = vector.extract_strided_slice %105 {offsets = [0, 0], sizes = [8, 32], strides = [1, 1]} : vector<8x128xf32> to vector<8x32xf32>
    %107 = math.tanh %106 : vector<8x32xf32>
    %108 = vector.extract_strided_slice %105 {offsets = [0, 32], sizes = [8, 32], strides = [1, 1]} : vector<8x128xf32> to vector<8x32xf32>
    %109 = math.tanh %108 : vector<8x32xf32>
    %110 = vector.extract_strided_slice %105 {offsets = [0, 64], sizes = [8, 32], strides = [1, 1]} : vector<8x128xf32> to vector<8x32xf32>
    %111 = vector.extract_strided_slice %105 {offsets = [0, 96], sizes = [8, 32], strides = [1, 1]} : vector<8x128xf32> to vector<8x32xf32>
    %cst_41 = arith.constant 1.000000e+00 : f32
    %112 = vector.broadcast %cst_41 : f32 to vector<8x32xf32>
    %113 = arith.mulf %110, %112 : vector<8x32xf32>
    %114 = arith.addf %113, %111 : vector<8x32xf32>
    %115 = arith.negf %114 : vector<8x32xf32>
    %116 = math.exp %115 : vector<8x32xf32>
    %cst_42 = arith.constant 1.000000e+00 : f32
    %117 = vector.broadcast %cst_42 : f32 to vector<8x32xf32>
    %118 = arith.addf %117, %116 : vector<8x32xf32>
    %119 = arith.divf %117, %118 : vector<8x32xf32>
    %cst_43 = arith.constant 1.000000e+00 : f32
    %120 = vector.broadcast %cst_43 : f32 to vector<8x32xf32>
    %121 = arith.subf %120, %119 : vector<8x32xf32>
    %122 = arith.mulf %107, %121 : vector<8x32xf32>
    %123 = arith.mulf %119, %109 : vector<8x32xf32>
    %124 = arith.addf %122, %123 : vector<8x32xf32>
    %125 = arith.index_cast %c2_i32 : i32 to index
    %c0_44 = arith.constant 0 : index
    %c0_45 = arith.constant 0 : index
    %126 = vector.load %arg8[%125, %c0_44, %c0_45] : memref<8x8x32xf32, #tpu.memory_space<vmem>>, vector<1x8x32xf32>
    %127 = vector.shape_cast %126 : vector<1x8x32xf32> to vector<8x32xf32>
    %128 = vector.shape_cast %124 : vector<8x32xf32> to vector<1x8x32xf32>
    tpu.vector_store %arg8[%125, %c0_44, %c0_45], %128 {strides = array<i32>} : memref<8x8x32xf32, #tpu.memory_space<vmem>>, vector<1x8x32xf32>,
    %c3_i32 = arith.constant 3 : i32
    %129 = arith.index_cast %c3_i32 : i32 to index
    %c0_46 = arith.constant 0 : index
    %c0_47 = arith.constant 0 : index
    %130 = vector.load %arg1[%129, %c0_46, %c0_47] : memref<8x8x8xbf16, #tpu.memory_space<vmem>>, vector<1x8x8xbf16>
    %131 = vector.shape_cast %130 : vector<1x8x8xbf16> to vector<8x8xbf16>
    %cst_48 = arith.constant dense<0.000000e+00> : vector<8x128xf32>
    %132 = tpu.matmul %131, %0, %cst_48 {dimension_numbers = #tpu.dot_dimension_numbers<[1], [0], [0], [1], [0, 0, 1, 1], [], []>} : vector<8x8xbf16>, vector<8x128xbf16>, vector<8x128xf32> -> vector<8x128xf32>
    %133 = arith.truncf %124 : vector<8x32xf32> to vector<8x32xbf16>
    %cst_49 = arith.constant dense<0.000000e+00> : vector<8x128xf32>
    %134 = tpu.matmul %133, %1, %cst_49 {dimension_numbers = #tpu.dot_dimension_numbers<[1], [0], [0], [1], [0, 0, 1, 1], [], []>} : vector<8x32xbf16>, vector<32x128xbf16>, vector<8x128xf32> -> vector<8x128xf32>
    %135 = arith.addf %132, %134 : vector<8x128xf32>
    %136 = vector.broadcast %2 : vector<1x128xf32> to vector<8x128xf32>
    %137 = arith.addf %135, %136 : vector<8x128xf32>
    %cst_50 = arith.constant 6.660000e-01 : f32
    %138 = vector.broadcast %cst_50 : f32 to vector<8x128xf32>
    %139 = arith.mulf %138, %137 : vector<8x128xf32>
    %140 = math.tanh %139 : vector<8x128xf32>
    %cst_51 = arith.constant 1.715900e+00 : f32
    %141 = vector.broadcast %cst_51 : f32 to vector<8x128xf32>
    %142 = arith.mulf %141, %140 : vector<8x128xf32>
    %143 = arith.truncf %142 : vector<8x128xf32> to vector<8x128xbf16>
    %cst_52 = arith.constant dense<0.000000e+00> : vector<8x128xf32>
    %144 = tpu.matmul %143, %3, %cst_52 {dimension_numbers = #tpu.dot_dimension_numbers<[1], [0], [0], [1], [0, 0, 1, 1], [], []>} : vector<8x128xbf16>, vector<128x128xbf16>, vector<8x128xf32> -> vector<8x128xf32>
    %145 = vector.broadcast %4 : vector<1x128xf32> to vector<8x128xf32>
    %146 = arith.addf %144, %145 : vector<8x128xf32>
    %147 = vector.extract_strided_slice %146 {offsets = [0, 0], sizes = [8, 32], strides = [1, 1]} : vector<8x128xf32> to vector<8x32xf32>
    %148 = math.tanh %147 : vector<8x32xf32>
    %149 = vector.extract_strided_slice %146 {offsets = [0, 32], sizes = [8, 32], strides = [1, 1]} : vector<8x128xf32> to vector<8x32xf32>
    %150 = math.tanh %149 : vector<8x32xf32>
    %151 = vector.extract_strided_slice %146 {offsets = [0, 64], sizes = [8, 32], strides = [1, 1]} : vector<8x128xf32> to vector<8x32xf32>
    %152 = vector.extract_strided_slice %146 {offsets = [0, 96], sizes = [8, 32], strides = [1, 1]} : vector<8x128xf32> to vector<8x32xf32>
    %cst_53 = arith.constant 1.000000e+00 : f32
    %153 = vector.broadcast %cst_53 : f32 to vector<8x32xf32>
    %154 = arith.mulf %151, %153 : vector<8x32xf32>
    %155 = arith.addf %154, %152 : vector<8x32xf32>
    %156 = arith.negf %155 : vector<8x32xf32>
    %157 = math.exp %156 : vector<8x32xf32>
    %cst_54 = arith.constant 1.000000e+00 : f32
    %158 = vector.broadcast %cst_54 : f32 to vector<8x32xf32>
    %159 = arith.addf %158, %157 : vector<8x32xf32>
    %160 = arith.divf %158, %159 : vector<8x32xf32>
    %cst_55 = arith.constant 1.000000e+00 : f32
    %161 = vector.broadcast %cst_55 : f32 to vector<8x32xf32>
    %162 = arith.subf %161, %160 : vector<8x32xf32>
    %163 = arith.mulf %148, %162 : vector<8x32xf32>
    %164 = arith.mulf %160, %150 : vector<8x32xf32>
    %165 = arith.addf %163, %164 : vector<8x32xf32>
    %166 = arith.index_cast %c3_i32 : i32 to index
    %c0_56 = arith.constant 0 : index
    %c0_57 = arith.constant 0 : index
    %167 = vector.load %arg8[%166, %c0_56, %c0_57] : memref<8x8x32xf32, #tpu.memory_space<vmem>>, vector<1x8x32xf32>
    %168 = vector.shape_cast %167 : vector<1x8x32xf32> to vector<8x32xf32>
    %169 = vector.shape_cast %165 : vector<8x32xf32> to vector<1x8x32xf32>
    tpu.vector_store %arg8[%166, %c0_56, %c0_57], %169 {strides = array<i32>} : memref<8x8x32xf32, #tpu.memory_space<vmem>>, vector<1x8x32xf32>,
    %c4_i32 = arith.constant 4 : i32
    %170 = arith.index_cast %c4_i32 : i32 to index
    %c0_58 = arith.constant 0 : index
    %c0_59 = arith.constant 0 : index
    %171 = vector.load %arg1[%170, %c0_58, %c0_59] : memref<8x8x8xbf16, #tpu.memory_space<vmem>>, vector<1x8x8xbf16>
    %172 = vector.shape_cast %171 : vector<1x8x8xbf16> to vector<8x8xbf16>
    %cst_60 = arith.constant dense<0.000000e+00> : vector<8x128xf32>
    %173 = tpu.matmul %172, %0, %cst_60 {dimension_numbers = #tpu.dot_dimension_numbers<[1], [0], [0], [1], [0, 0, 1, 1], [], []>} : vector<8x8xbf16>, vector<8x128xbf16>, vector<8x128xf32> -> vector<8x128xf32>
    %174 = arith.truncf %165 : vector<8x32xf32> to vector<8x32xbf16>
    %cst_61 = arith.constant dense<0.000000e+00> : vector<8x128xf32>
    %175 = tpu.matmul %174, %1, %cst_61 {dimension_numbers = #tpu.dot_dimension_numbers<[1], [0], [0], [1], [0, 0, 1, 1], [], []>} : vector<8x32xbf16>, vector<32x128xbf16>, vector<8x128xf32> -> vector<8x128xf32>
    %176 = arith.addf %173, %175 : vector<8x128xf32>
    %177 = vector.broadcast %2 : vector<1x128xf32> to vector<8x128xf32>
    %178 = arith.addf %176, %177 : vector<8x128xf32>
    %cst_62 = arith.constant 6.660000e-01 : f32
    %179 = vector.broadcast %cst_62 : f32 to vector<8x128xf32>
    %180 = arith.mulf %179, %178 : vector<8x128xf32>
    %181 = math.tanh %180 : vector<8x128xf32>
    %cst_63 = arith.constant 1.715900e+00 : f32
    %182 = vector.broadcast %cst_63 : f32 to vector<8x128xf32>
    %183 = arith.mulf %182, %181 : vector<8x128xf32>
    %184 = arith.truncf %183 : vector<8x128xf32> to vector<8x128xbf16>
    %cst_64 = arith.constant dense<0.000000e+00> : vector<8x128xf32>
    %185 = tpu.matmul %184, %3, %cst_64 {dimension_numbers = #tpu.dot_dimension_numbers<[1], [0], [0], [1], [0, 0, 1, 1], [], []>} : vector<8x128xbf16>, vector<128x128xbf16>, vector<8x128xf32> -> vector<8x128xf32>
    %186 = vector.broadcast %4 : vector<1x128xf32> to vector<8x128xf32>
    %187 = arith.addf %185, %186 : vector<8x128xf32>
    %188 = vector.extract_strided_slice %187 {offsets = [0, 0], sizes = [8, 32], strides = [1, 1]} : vector<8x128xf32> to vector<8x32xf32>
    %189 = math.tanh %188 : vector<8x32xf32>
    %190 = vector.extract_strided_slice %187 {offsets = [0, 32], sizes = [8, 32], strides = [1, 1]} : vector<8x128xf32> to vector<8x32xf32>
    %191 = math.tanh %190 : vector<8x32xf32>
    %192 = vector.extract_strided_slice %187 {offsets = [0, 64], sizes = [8, 32], strides = [1, 1]} : vector<8x128xf32> to vector<8x32xf32>
    %193 = vector.extract_strided_slice %187 {offsets = [0, 96], sizes = [8, 32], strides = [1, 1]} : vector<8x128xf32> to vector<8x32xf32>
    %cst_65 = arith.constant 1.000000e+00 : f32
    %194 = vector.broadcast %cst_65 : f32 to vector<8x32xf32>
    %195 = arith.mulf %192, %194 : vector<8x32xf32>
    %196 = arith.addf %195, %193 : vector<8x32xf32>
    %197 = arith.negf %196 : vector<8x32xf32>
    %198 = math.exp %197 : vector<8x32xf32>
    %cst_66 = arith.constant 1.000000e+00 : f32
    %199 = vector.broadcast %cst_66 : f32 to vector<8x32xf32>
    %200 = arith.addf %199, %198 : vector<8x32xf32>
    %201 = arith.divf %199, %200 : vector<8x32xf32>
    %cst_67 = arith.constant 1.000000e+00 : f32
    %202 = vector.broadcast %cst_67 : f32 to vector<8x32xf32>
    %203 = arith.subf %202, %201 : vector<8x32xf32>
    %204 = arith.mulf %189, %203 : vector<8x32xf32>
    %205 = arith.mulf %201, %191 : vector<8x32xf32>
    %206 = arith.addf %204, %205 : vector<8x32xf32>
    %207 = arith.index_cast %c4_i32 : i32 to index
    %c0_68 = arith.constant 0 : index
    %c0_69 = arith.constant 0 : index
    %208 = vector.load %arg8[%207, %c0_68, %c0_69] : memref<8x8x32xf32, #tpu.memory_space<vmem>>, vector<1x8x32xf32>
    %209 = vector.shape_cast %208 : vector<1x8x32xf32> to vector<8x32xf32>
    %210 = vector.shape_cast %206 : vector<8x32xf32> to vector<1x8x32xf32>
    tpu.vector_store %arg8[%207, %c0_68, %c0_69], %210 {strides = array<i32>} : memref<8x8x32xf32, #tpu.memory_space<vmem>>, vector<1x8x32xf32>,
    %c5_i32 = arith.constant 5 : i32
    %211 = arith.index_cast %c5_i32 : i32 to index
    %c0_70 = arith.constant 0 : index
    %c0_71 = arith.constant 0 : index
    %212 = vector.load %arg1[%211, %c0_70, %c0_71] : memref<8x8x8xbf16, #tpu.memory_space<vmem>>, vector<1x8x8xbf16>
    %213 = vector.shape_cast %212 : vector<1x8x8xbf16> to vector<8x8xbf16>
    %cst_72 = arith.constant dense<0.000000e+00> : vector<8x128xf32>
    %214 = tpu.matmul %213, %0, %cst_72 {dimension_numbers = #tpu.dot_dimension_numbers<[1], [0], [0], [1], [0, 0, 1, 1], [], []>} : vector<8x8xbf16>, vector<8x128xbf16>, vector<8x128xf32> -> vector<8x128xf32>
    %215 = arith.truncf %206 : vector<8x32xf32> to vector<8x32xbf16>
    %cst_73 = arith.constant dense<0.000000e+00> : vector<8x128xf32>
    %216 = tpu.matmul %215, %1, %cst_73 {dimension_numbers = #tpu.dot_dimension_numbers<[1], [0], [0], [1], [0, 0, 1, 1], [], []>} : vector<8x32xbf16>, vector<32x128xbf16>, vector<8x128xf32> -> vector<8x128xf32>
    %217 = arith.addf %214, %216 : vector<8x128xf32>
    %218 = vector.broadcast %2 : vector<1x128xf32> to vector<8x128xf32>
    %219 = arith.addf %217, %218 : vector<8x128xf32>
    %cst_74 = arith.constant 6.660000e-01 : f32
    %220 = vector.broadcast %cst_74 : f32 to vector<8x128xf32>
    %221 = arith.mulf %220, %219 : vector<8x128xf32>
    %222 = math.tanh %221 : vector<8x128xf32>
    %cst_75 = arith.constant 1.715900e+00 : f32
    %223 = vector.broadcast %cst_75 : f32 to vector<8x128xf32>
    %224 = arith.mulf %223, %222 : vector<8x128xf32>
    %225 = arith.truncf %224 : vector<8x128xf32> to vector<8x128xbf16>
    %cst_76 = arith.constant dense<0.000000e+00> : vector<8x128xf32>
    %226 = tpu.matmul %225, %3, %cst_76 {dimension_numbers = #tpu.dot_dimension_numbers<[1], [0], [0], [1], [0, 0, 1, 1], [], []>} : vector<8x128xbf16>, vector<128x128xbf16>, vector<8x128xf32> -> vector<8x128xf32>
    %227 = vector.broadcast %4 : vector<1x128xf32> to vector<8x128xf32>
    %228 = arith.addf %226, %227 : vector<8x128xf32>
    %229 = vector.extract_strided_slice %228 {offsets = [0, 0], sizes = [8, 32], strides = [1, 1]} : vector<8x128xf32> to vector<8x32xf32>
    %230 = math.tanh %229 : vector<8x32xf32>
    %231 = vector.extract_strided_slice %228 {offsets = [0, 32], sizes = [8, 32], strides = [1, 1]} : vector<8x128xf32> to vector<8x32xf32>
    %232 = math.tanh %231 : vector<8x32xf32>
    %233 = vector.extract_strided_slice %228 {offsets = [0, 64], sizes = [8, 32], strides = [1, 1]} : vector<8x128xf32> to vector<8x32xf32>
    %234 = vector.extract_strided_slice %228 {offsets = [0, 96], sizes = [8, 32], strides = [1, 1]} : vector<8x128xf32> to vector<8x32xf32>
    %cst_77 = arith.constant 1.000000e+00 : f32
    %235 = vector.broadcast %cst_77 : f32 to vector<8x32xf32>
    %236 = arith.mulf %233, %235 : vector<8x32xf32>
    %237 = arith.addf %236, %234 : vector<8x32xf32>
    %238 = arith.negf %237 : vector<8x32xf32>
    %239 = math.exp %238 : vector<8x32xf32>
    %cst_78 = arith.constant 1.000000e+00 : f32
    %240 = vector.broadcast %cst_78 : f32 to vector<8x32xf32>
    %241 = arith.addf %240, %239 : vector<8x32xf32>
    %242 = arith.divf %240, %241 : vector<8x32xf32>
    %cst_79 = arith.constant 1.000000e+00 : f32
    %243 = vector.broadcast %cst_79 : f32 to vector<8x32xf32>
    %244 = arith.subf %243, %242 : vector<8x32xf32>
    %245 = arith.mulf %230, %244 : vector<8x32xf32>
    %246 = arith.mulf %242, %232 : vector<8x32xf32>
    %247 = arith.addf %245, %246 : vector<8x32xf32>
    %248 = arith.index_cast %c5_i32 : i32 to index
    %c0_80 = arith.constant 0 : index
    %c0_81 = arith.constant 0 : index
    %249 = vector.load %arg8[%248, %c0_80, %c0_81] : memref<8x8x32xf32, #tpu.memory_space<vmem>>, vector<1x8x32xf32>
    %250 = vector.shape_cast %249 : vector<1x8x32xf32> to vector<8x32xf32>
    %251 = vector.shape_cast %247 : vector<8x32xf32> to vector<1x8x32xf32>
    tpu.vector_store %arg8[%248, %c0_80, %c0_81], %251 {strides = array<i32>} : memref<8x8x32xf32, #tpu.memory_space<vmem>>, vector<1x8x32xf32>,
    %c6_i32 = arith.constant 6 : i32
    %252 = arith.index_cast %c6_i32 : i32 to index
    %c0_82 = arith.constant 0 : index
    %c0_83 = arith.constant 0 : index
    %253 = vector.load %arg1[%252, %c0_82, %c0_83] : memref<8x8x8xbf16, #tpu.memory_space<vmem>>, vector<1x8x8xbf16>
    %254 = vector.shape_cast %253 : vector<1x8x8xbf16> to vector<8x8xbf16>
    %cst_84 = arith.constant dense<0.000000e+00> : vector<8x128xf32>
    %255 = tpu.matmul %254, %0, %cst_84 {dimension_numbers = #tpu.dot_dimension_numbers<[1], [0], [0], [1], [0, 0, 1, 1], [], []>} : vector<8x8xbf16>, vector<8x128xbf16>, vector<8x128xf32> -> vector<8x128xf32>
    %256 = arith.truncf %247 : vector<8x32xf32> to vector<8x32xbf16>
    %cst_85 = arith.constant dense<0.000000e+00> : vector<8x128xf32>
    %257 = tpu.matmul %256, %1, %cst_85 {dimension_numbers = #tpu.dot_dimension_numbers<[1], [0], [0], [1], [0, 0, 1, 1], [], []>} : vector<8x32xbf16>, vector<32x128xbf16>, vector<8x128xf32> -> vector<8x128xf32>
    %258 = arith.addf %255, %257 : vector<8x128xf32>
    %259 = vector.broadcast %2 : vector<1x128xf32> to vector<8x128xf32>
    %260 = arith.addf %258, %259 : vector<8x128xf32>
    %cst_86 = arith.constant 6.660000e-01 : f32
    %261 = vector.broadcast %cst_86 : f32 to vector<8x128xf32>
    %262 = arith.mulf %261, %260 : vector<8x128xf32>
    %263 = math.tanh %262 : vector<8x128xf32>
    %cst_87 = arith.constant 1.715900e+00 : f32
    %264 = vector.broadcast %cst_87 : f32 to vector<8x128xf32>
    %265 = arith.mulf %264, %263 : vector<8x128xf32>
    %266 = arith.truncf %265 : vector<8x128xf32> to vector<8x128xbf16>
    %cst_88 = arith.constant dense<0.000000e+00> : vector<8x128xf32>
    %267 = tpu.matmul %266, %3, %cst_88 {dimension_numbers = #tpu.dot_dimension_numbers<[1], [0], [0], [1], [0, 0, 1, 1], [], []>} : vector<8x128xbf16>, vector<128x128xbf16>, vector<8x128xf32> -> vector<8x128xf32>
    %268 = vector.broadcast %4 : vector<1x128xf32> to vector<8x128xf32>
    %269 = arith.addf %267, %268 : vector<8x128xf32>
    %270 = vector.extract_strided_slice %269 {offsets = [0, 0], sizes = [8, 32], strides = [1, 1]} : vector<8x128xf32> to vector<8x32xf32>
    %271 = math.tanh %270 : vector<8x32xf32>
    %272 = vector.extract_strided_slice %269 {offsets = [0, 32], sizes = [8, 32], strides = [1, 1]} : vector<8x128xf32> to vector<8x32xf32>
    %273 = math.tanh %272 : vector<8x32xf32>
    %274 = vector.extract_strided_slice %269 {offsets = [0, 64], sizes = [8, 32], strides = [1, 1]} : vector<8x128xf32> to vector<8x32xf32>
    %275 = vector.extract_strided_slice %269 {offsets = [0, 96], sizes = [8, 32], strides = [1, 1]} : vector<8x128xf32> to vector<8x32xf32>
    %cst_89 = arith.constant 1.000000e+00 : f32
    %276 = vector.broadcast %cst_89 : f32 to vector<8x32xf32>
    %277 = arith.mulf %274, %276 : vector<8x32xf32>
    %278 = arith.addf %277, %275 : vector<8x32xf32>
    %279 = arith.negf %278 : vector<8x32xf32>
    %280 = math.exp %279 : vector<8x32xf32>
    %cst_90 = arith.constant 1.000000e+00 : f32
    %281 = vector.broadcast %cst_90 : f32 to vector<8x32xf32>
    %282 = arith.addf %281, %280 : vector<8x32xf32>
    %283 = arith.divf %281, %282 : vector<8x32xf32>
    %cst_91 = arith.constant 1.000000e+00 : f32
    %284 = vector.broadcast %cst_91 : f32 to vector<8x32xf32>
    %285 = arith.subf %284, %283 : vector<8x32xf32>
    %286 = arith.mulf %271, %285 : vector<8x32xf32>
    %287 = arith.mulf %283, %273 : vector<8x32xf32>
    %288 = arith.addf %286, %287 : vector<8x32xf32>
    %289 = arith.index_cast %c6_i32 : i32 to index
    %c0_92 = arith.constant 0 : index
    %c0_93 = arith.constant 0 : index
    %290 = vector.load %arg8[%289, %c0_92, %c0_93] : memref<8x8x32xf32, #tpu.memory_space<vmem>>, vector<1x8x32xf32>
    %291 = vector.shape_cast %290 : vector<1x8x32xf32> to vector<8x32xf32>
    %292 = vector.shape_cast %288 : vector<8x32xf32> to vector<1x8x32xf32>
    tpu.vector_store %arg8[%289, %c0_92, %c0_93], %292 {strides = array<i32>} : memref<8x8x32xf32, #tpu.memory_space<vmem>>, vector<1x8x32xf32>,
    %c7_i32 = arith.constant 7 : i32
    %293 = arith.index_cast %c7_i32 : i32 to index
    %c0_94 = arith.constant 0 : index
    %c0_95 = arith.constant 0 : index
    %294 = vector.load %arg1[%293, %c0_94, %c0_95] : memref<8x8x8xbf16, #tpu.memory_space<vmem>>, vector<1x8x8xbf16>
    %295 = vector.shape_cast %294 : vector<1x8x8xbf16> to vector<8x8xbf16>
    %cst_96 = arith.constant dense<0.000000e+00> : vector<8x128xf32>
    %296 = tpu.matmul %295, %0, %cst_96 {dimension_numbers = #tpu.dot_dimension_numbers<[1], [0], [0], [1], [0, 0, 1, 1], [], []>} : vector<8x8xbf16>, vector<8x128xbf16>, vector<8x128xf32> -> vector<8x128xf32>
    %297 = arith.truncf %288 : vector<8x32xf32> to vector<8x32xbf16>
    %cst_97 = arith.constant dense<0.000000e+00> : vector<8x128xf32>
    %298 = tpu.matmul %297, %1, %cst_97 {dimension_numbers = #tpu.dot_dimension_numbers<[1], [0], [0], [1], [0, 0, 1, 1], [], []>} : vector<8x32xbf16>, vector<32x128xbf16>, vector<8x128xf32> -> vector<8x128xf32>
    %299 = arith.addf %296, %298 : vector<8x128xf32>
    %300 = vector.broadcast %2 : vector<1x128xf32> to vector<8x128xf32>
    %301 = arith.addf %299, %300 : vector<8x128xf32>
    %cst_98 = arith.constant 6.660000e-01 : f32
    %302 = vector.broadcast %cst_98 : f32 to vector<8x128xf32>
    %303 = arith.mulf %302, %301 : vector<8x128xf32>
    %304 = math.tanh %303 : vector<8x128xf32>
    %cst_99 = arith.constant 1.715900e+00 : f32
    %305 = vector.broadcast %cst_99 : f32 to vector<8x128xf32>
    %306 = arith.mulf %305, %304 : vector<8x128xf32>
    %307 = arith.truncf %306 : vector<8x128xf32> to vector<8x128xbf16>
    %cst_100 = arith.constant dense<0.000000e+00> : vector<8x128xf32>
    %308 = tpu.matmul %307, %3, %cst_100 {dimension_numbers = #tpu.dot_dimension_numbers<[1], [0], [0], [1], [0, 0, 1, 1], [], []>} : vector<8x128xbf16>, vector<128x128xbf16>, vector<8x128xf32> -> vector<8x128xf32>
    %309 = vector.broadcast %4 : vector<1x128xf32> to vector<8x128xf32>
    %310 = arith.addf %308, %309 : vector<8x128xf32>
    %311 = vector.extract_strided_slice %310 {offsets = [0, 0], sizes = [8, 32], strides = [1, 1]} : vector<8x128xf32> to vector<8x32xf32>
    %312 = math.tanh %311 : vector<8x32xf32>
    %313 = vector.extract_strided_slice %310 {offsets = [0, 32], sizes = [8, 32], strides = [1, 1]} : vector<8x128xf32> to vector<8x32xf32>
    %314 = math.tanh %313 : vector<8x32xf32>
    %315 = vector.extract_strided_slice %310 {offsets = [0, 64], sizes = [8, 32], strides = [1, 1]} : vector<8x128xf32> to vector<8x32xf32>
    %316 = vector.extract_strided_slice %310 {offsets = [0, 96], sizes = [8, 32], strides = [1, 1]} : vector<8x128xf32> to vector<8x32xf32>
    %cst_101 = arith.constant 1.000000e+00 : f32
    %317 = vector.broadcast %cst_101 : f32 to vector<8x32xf32>
    %318 = arith.mulf %315, %317 : vector<8x32xf32>
    %319 = arith.addf %318, %316 : vector<8x32xf32>
    %320 = arith.negf %319 : vector<8x32xf32>
    %321 = math.exp %320 : vector<8x32xf32>
    %cst_102 = arith.constant 1.000000e+00 : f32
    %322 = vector.broadcast %cst_102 : f32 to vector<8x32xf32>
    %323 = arith.addf %322, %321 : vector<8x32xf32>
    %324 = arith.divf %322, %323 : vector<8x32xf32>
    %cst_103 = arith.constant 1.000000e+00 : f32
    %325 = vector.broadcast %cst_103 : f32 to vector<8x32xf32>
    %326 = arith.subf %325, %324 : vector<8x32xf32>
    %327 = arith.mulf %312, %326 : vector<8x32xf32>
    %328 = arith.mulf %324, %314 : vector<8x32xf32>
    %329 = arith.addf %327, %328 : vector<8x32xf32>
    %330 = arith.index_cast %c7_i32 : i32 to index
    %c0_104 = arith.constant 0 : index
    %c0_105 = arith.constant 0 : index
    %331 = vector.load %arg8[%330, %c0_104, %c0_105] : memref<8x8x32xf32, #tpu.memory_space<vmem>>, vector<1x8x32xf32>
    %332 = vector.shape_cast %331 : vector<1x8x32xf32> to vector<8x32xf32>
    %333 = vector.shape_cast %329 : vector<8x32xf32> to vector<1x8x32xf32>
    tpu.vector_store %arg8[%330, %c0_104, %c0_105], %333 {strides = array<i32>} : memref<8x8x32xf32, #tpu.memory_space<vmem>>, vector<1x8x32xf32>,
    %c8_i32 = arith.constant 8 : i32
    %c0_106 = arith.constant 0 : index
    %c0_107 = arith.constant 0 : index
    %334 = vector.load %arg9[%c0_106, %c0_107] : memref<8x32xf32, #tpu.memory_space<vmem>>, vector<8x32xf32>
    tpu.vector_store %arg9[%c0_106, %c0_107], %329 {strides = array<i32>} : memref<8x32xf32, #tpu.memory_space<vmem>>, vector<8x32xf32>,
    return
  }
  func.func @transform_0(%arg0: i32) -> (i32, i32, i32) {
    %c0_i32 = arith.constant 0 : i32
    %c0_i32_0 = arith.constant 0 : i32
    %c0_i32_1 = arith.constant 0 : i32
    %c0_i32_2 = arith.constant 0 : i32
    return %c0_i32, %c0_i32_0, %c0_i32_1 : i32, i32, i32
  }
  func.func @transform_1(%arg0: i32) -> (i32, i32) {
    %c0_i32 = arith.constant 0 : i32
    %c0_i32_0 = arith.constant 0 : i32
    %c0_i32_1 = arith.constant 0 : i32
    return %c0_i32, %c0_i32_0 : i32, i32
  }
  func.func @transform_2(%arg0: i32) -> (i32, i32) {
    %c0_i32 = arith.constant 0 : i32
    %c0_i32_0 = arith.constant 0 : i32
    %c0_i32_1 = arith.constant 0 : i32
    return %c0_i32, %c0_i32_0 : i32, i32
  }
  func.func @transform_3(%arg0: i32) -> (i32, i32) {
    %c0_i32 = arith.constant 0 : i32
    %c0_i32_0 = arith.constant 0 : i32
    %c0_i32_1 = arith.constant 0 : i32
    return %c0_i32, %c0_i32_0 : i32, i32
  }
  func.func @transform_4(%arg0: i32) -> (i32, i32) {
    %c0_i32 = arith.constant 0 : i32
    %c0_i32_0 = arith.constant 0 : i32
    %c0_i32_1 = arith.constant 0 : i32
    return %c0_i32, %c0_i32_0 : i32, i32
  }
  func.func @transform_5(%arg0: i32) -> (i32, i32) {
    %c0_i32 = arith.constant 0 : i32
    %c0_i32_0 = arith.constant 0 : i32
    %c0_i32_1 = arith.constant 0 : i32
    return %c0_i32, %c0_i32_0 : i32, i32
  }
  func.func @transform_6(%arg0: i32) -> (i32, i32) {
    %c0_i32 = arith.constant 0 : i32
    %c0_i32_0 = arith.constant 0 : i32
    %c0_i32_1 = arith.constant 0 : i32
    return %c0_i32, %c0_i32_0 : i32, i32
  }
  func.func @transform_7(%arg0: i32) -> (i32, i32, i32) {
    %c0_i32 = arith.constant 0 : i32
    %c0_i32_0 = arith.constant 0 : i32
    %c0_i32_1 = arith.constant 0 : i32
    %c0_i32_2 = arith.constant 0 : i32
    return %c0_i32, %c0_i32_0, %c0_i32_1 : i32, i32, i32
  }
  func.func @transform_8(%arg0: i32) -> (i32, i32) {
    %c0_i32 = arith.constant 0 : i32
    %c0_i32_0 = arith.constant 0 : i32
    %c0_i32_1 = arith.constant 0 : i32
    return %c0_i32, %c0_i32_0 : i32, i32
  }
}

</mosaic_0001>

<bundles_post_ra>
// kernel: tpu_custom_call.1
= control target key start
LH: loop header
LB: loop body
LE: loop exit
PB: predicated region body
PF: predicated region fallthrough
CT: control target
= control target key end

     0   :  { %14 = vsyncpa [#allocation3], 0  ;;  %s2673_s0 = inlined_call_operand.hbm [shape: bf16[8,8,8], index: 0, kind: input, shape index: {}]   ;;  %s2674_s1 = inlined_call_operand.hbm [shape: f32[8,32], index: 1, kind: input, shape index: {}]   ;;  %s2675_s2 = inlined_call_operand.vmem [shape: bf16[8,128], index: 2, kind: input, shape index: {}]   ;;  %s2676_s3 = inlined_call_operand.hbm [shape: bf16[32,128], index: 3, kind: input, shape index: {}]   ;;  %s2677_s4 = inlined_call_operand.vmem [shape: f32[1,128], index: 4, kind: input, shape index: {}]   ;;  %s2678_s5 = inlined_call_operand.hbm [shape: bf16[128,128], index: 5, kind: input, shape index: {}]   ;;  %s2679_s6 = inlined_call_operand.vmem [shape: f32[1,128], index: 6, kind: input, shape index: {}]   ;;  %s2680_s7 = inlined_call_operand.hbm [shape: f32[8,8,32], index: 7, kind: output, shape index: {0}]   ;;  %s2681_s8 = inlined_call_operand.hbm [shape: f32[8,32], index: 8, kind: output, shape index: {1}]  }
   0x1   :  { %15 = vsyncpa [#allocation6], 0 }
   0x2   :  { %16 = vsyncpa [#allocation9], 0 }
   0x3   :  { %17 = vsyncpa [#allocation4], 0 }
   0x4   :  { %18 = vsyncpa [#allocation12], 0  ;;  %s2180_s27 = smov [#allocation5]   ;;  %s2181_s29 = smov [#allocation2]  }
   0x5   :  { %s37_s28 = sshll.u32 %s2180_s27, 4  ;;  %s24_s30 = sshll.u32 %s2181_s29, 4  ;;  %s38_s28 = int_to_ptr.vmem [resolvable:$true] %s37_s28  ;;  %s2239_s30 = int_to_ptr.vmem [resolvable:$true] %s24_s30 }
   0x6   :  { %s2038_s11 = scalar_lea.hbm %s2674_s1, 128 }
   0x7   :  { %p2039_p0 = scmp.ne.s32.totalorder %s2674_s1, %s2038_s11  ;;  %p2042_p1 = scmp.lt.u32.totalorder %s2038_s11, %s2674_s1 }
   0x9   :  { %p2044_p2 = pnand %p2042_p1, %p2039_p0 }
   0xb   :  { %2047 = shalt.err (!%p2044_p2)
}
   0xc   :  { %s2048_s16 = scalar_lea.vmem %s38_s28, 128  ;;  %p2053_p4 = scmp.lt.s32.totalorder %s38_s28, %s38_s28 }
   0xd   :  { %p2049_p3 = scmp.ne.s32.totalorder %s38_s28, %s2048_s16  ;;  %p2054_p5 = scmp.lt.s32.totalorder %s2048_s16, %s2048_s16 }
   0xf   :  { %p2055_p6 = por %p2054_p5, %p2053_p4 }
  0x11   :  { %p2056_p7 = pnand %p2055_p6, %p2049_p3 }
  0x13   :  { %2059 = shalt.err (!%p2056_p7)
}
  0x14   :  { %40 = dma.hbm_to_vmem [thread:$0]  %s2674_s1, 128, %s38_s28, [#allocation6]  }
  0x15   :  { %s2060_s21 = scalar_lea.hbm %s2673_s0, 512 }
  0x16   :  { %p2061_p8 = scmp.ne.s32.totalorder %s2673_s0, %s2060_s21  ;;  %p2064_p9 = scmp.lt.u32.totalorder %s2060_s21, %s2673_s0 }
  0x18   :  { %p2066_p10 = pnand %p2064_p9, %p2061_p8 }
  0x1a   :  { %2069 = shalt.err (!%p2066_p10)
}
  0x1b   :  { %s2070_s26 = scalar_lea.vmem %s2239_s30, 512  ;;  %p2075_p12 = scmp.lt.s32.totalorder %s2239_s30, %s2239_s30 }
  0x1c   :  { %p2071_p11 = scmp.ne.s32.totalorder %s2239_s30, %s2070_s26  ;;  %p2076_p13 = scmp.lt.s32.totalorder %s2070_s26, %s2070_s26 }
  0x1e   :  { %p2077_p0 = por %p2076_p13, %p2075_p12 }
  0x20   :  { %p2078_p1 = pnand %p2077_p0, %p2071_p11 }
  0x22   :  { %2081 = shalt.err (!%p2078_p1)
}
  0x23   :  { %s2182_s1 = smov 64   ;;  %s2183_s27 = smov 4  }
  0x24   :  { %30 = dma.hbm_to_vmem [thread:$0]  %s2673_s0, 512, %s2239_s30, [#allocation3], %s2182_s1, %s2182_s1, %s2183_s27  }
  0x25   :  { %s2184_s9 = smov [#allocation7]   ;;  %s2185_s11 = smov [#allocation8]  }
  0x26   :  { %s48_s10 = sshll.u32 %s2184_s9, 4  ;;  %s62_s12 = sshll.u32 %s2185_s11, 4  ;;  %s49_s10 = int_to_ptr.vmem [resolvable:$true] %s48_s10  ;;  %s2273_s12 = int_to_ptr.vmem [resolvable:$true] %s62_s12 }
  0x27   :  { %s2082_s15 = scalar_lea.hbm %s2676_s3, 256 }
  0x28   :  { %p2083_p2 = scmp.ne.s32.totalorder %s2676_s3, %s2082_s15  ;;  %p2086_p3 = scmp.lt.u32.totalorder %s2082_s15, %s2676_s3 }
  0x2a   :  { %p2088_p4 = pnand %p2086_p3, %p2083_p2 }
  0x2c   :  { %2091 = shalt.err (!%p2088_p4)
}
  0x2d   :  { %s2092_s0 = scalar_lea.vmem %s49_s10, 256  ;;  %p2097_p6 = scmp.lt.s32.totalorder %s49_s10, %s49_s10 }
  0x2e   :  { %p2093_p5 = scmp.ne.s32.totalorder %s49_s10, %s2092_s0  ;;  %p2098_p7 = scmp.lt.s32.totalorder %s2092_s0, %s2092_s0 }
  0x30   :  { %p2099_p8 = por %p2098_p7, %p2097_p6 }
  0x32   :  { %p2100_p9 = pnand %p2099_p8, %p2093_p5 }
  0x34   :  { %2103 = shalt.err (!%p2100_p9)
}
  0x35   :  { %54 = dma.hbm_to_vmem [thread:$0]  %s2676_s3, 256, %s49_s10, [#allocation6], %s2182_s1, %s2182_s1, %s2183_s27  }
  0x36   :  { %s2104_s23 = scalar_lea.hbm %s2678_s5, 1024 }
  0x37   :  { %p2105_p10 = scmp.ne.s32.totalorder %s2678_s5, %s2104_s23  ;;  %p2108_p11 = scmp.lt.u32.totalorder %s2104_s23, %s2678_s5 }
  0x39   :  { %p2110_p12 = pnand %p2108_p11, %p2105_p10 }
  0x3b   :  { %2113 = shalt.err (!%p2110_p12)
}
  0x3c   :  { %s2114_s29 = scalar_lea.vmem %s2273_s12, 1024  ;;  %p2119_p0 = scmp.lt.s32.totalorder %s2273_s12, %s2273_s12 }
  0x3d   :  { %p2115_p13 = scmp.ne.s32.totalorder %s2273_s12, %s2114_s29  ;;  %p2120_p1 = scmp.lt.s32.totalorder %s2114_s29, %s2114_s29 }
  0x3f   :  { %p2121_p2 = por %p2120_p1, %p2119_p0 }
  0x41   :  { %p2122_p3 = pnand %p2121_p2, %p2115_p13 }
  0x43   :  { %2125 = shalt.err (!%p2122_p3)
}
  0x44   :  { %68 = dma.hbm_to_vmem [thread:$0]  %s2678_s5, 1024, %s2273_s12, [#allocation9], %s2182_s1, %s2182_s1, %s2183_s27  }
  0x45   :  { %2170 = dma.done.wait [#allocation3], 512  }
  0x46   :  { %2171 = vsyncadd [#allocation3], 4294966784 }
  0x47   :  { %2172 = dma.done.wait [#allocation6], 384  }
  0x48   :  { %2173 = vsyncadd [#allocation6], 4294966912 }
  0x49   :  { %2174 = dma.done.wait [#allocation9], 1024  }
  0x4a   :  { %2175 = vsyncadd [#allocation9], 4294966272  ;;  %v2186_v0 = vmov 0.0   ;;  %vm2187_vm0 = vmmov 0   ;;  %v2316_v1 = vld [vmem:[#allocation7] sm:$0xff]   ;;  %vm170_vm1 = vcmask 1043456  }
  0x4b   :  { %1678 = vmatprep.subr.bf16.mxu1 %v2186_v0  ;;  %1682 = vmatprep.mubr.msk.bf16.mxu1 %vm2187_vm0, %v2186_v0  ;;  %v2319_v2 = vld [vmem:[#allocation7 + $0x8] sm:$0xff]   ;;  %v107_v3 = vld [vmem:[#allocation5] sm:$0xff]  ;;  %vm122_vm2 = vcmask 261120   ;;  %vm166_vm3 = vcmask 64512   ;;  %v2338_v8 = vld [vmem:[#allocation8] sm:$0xff]   ;;  %s2188_s12 = smov 96  }
  0x4c   :  { %1712 = vmatprep.subr.bf16.mxu0 %v2186_v0  ;;  %1716 = vmatprep.mubr.msk.bf16.mxu0 %vm2187_vm0, %v2186_v0  ;;  %v84_v4 = vld [vmem:[%s2675_s2] sm:$0xf]  ;;  %v109_v6 = vpack.c.bf16 %v107_v3, %v107_v3  ;;  %v2348_v10 = vld [vmem:[#allocation8 + $0x10] sm:$0xff]   ;;  %v2353_v11 = vld [vmem:[#allocation8 + $0x18] sm:$0xff]   ;;  %s2189_s13 = smov 32   ;;  %s2191_s15 = smov [#allocation11]  }
  0x4d   :  { %1679 = vmatpush3.bf16.msra.mxu1 %v2316_v1  ;;  %1713 = vmatpush3.bf16.msra.mxu0 %v2316_v1  ;;  %v2326_v5 = vsel %vm170_vm1, %v84_v4, 0  ;;  %v108_v7 = vld [vmem:[#allocation2] sm:$0xf]  ;;  %v2357_v12 = vld [vmem:[#allocation8 + $0x20] sm:$0xff]   ;;  %v2365_v14 = vld [vmem:[#allocation8 + $0x30] sm:$0xff]   ;;  %s1515_s16 = sshll.u32 %s2191_s15, 4  ;;  %s2640_s16 = int_to_ptr.vmem [resolvable:$true] %s1515_s16 }
  0x4e   :  { %1680 = vmatprep.subr.bf16.mxu1 %v2186_v0  ;;  %1714 = vmatprep.subr.bf16.mxu0 %v2186_v0  ;;  %v2345_v9 = vld [vmem:[#allocation8 + $0x8] sm:$0xff]   ;;  %v2369_v15 = vld [vmem:[#allocation8 + $0x38] sm:$0xff]  }
  0x4f   :  { %v2361_v13 = vld [vmem:[#allocation8 + $0x28] sm:$0xff]  }
  0x50   :  { %v2376_v20 = vld [vmem:[%s2677_s4] ss:$0 sm:$0xff]  ;;  %v349_v52 = vld [vmem:[#allocation2 + $0x4] sm:$0xf] }
  0x51   :  { %1681 = vmatpush3.bf16.msra.mxu1 %v2319_v2  ;;  %1715 = vmatpush3.bf16.msra.mxu0 %v2319_v2  ;;  %v2388_v31 = vld [vmem:[%s2679_s6] ss:$0 sm:$0xff]  ;;  %s2190_s6 = smov [#allocation10]  }
  0x52   :  { %1686 = vmatprep.subr.bf16.mxu1 %v2186_v0  ;;  %1720 = vmatprep.subr.bf16.mxu0 %v2186_v0  ;;  %s1502_s14 = sshll.u32 %s2190_s6, 4  ;;  %s1503_s14 = int_to_ptr.vmem [resolvable:$true] %s1502_s14 }
  0x53   :  { %s2126_s17 = scalar_lea.vmem %s1503_s14, 1024  ;;  %p2131_p5 = scmp.lt.s32.totalorder %s1503_s14, %s1503_s14 }
  0x54   :  { %1683 = vmatmul.mubr.msk.bf16.vlgmr.msra.gmra.mrb[0].mxu1 %vm122_vm2, %v109_v6  ;;  %p2127_p4 = scmp.ne.s32.totalorder %s1503_s14, %s2126_s17  ;;  %p2132_p6 = scmp.lt.s32.totalorder %s2126_s17, %s2126_s17 }
  0x55   :  { %1687 = vmatpush3.bf16.msra.mxu1 %v2326_v5  ;;  %1688 = vmatprep.mubr.msk.bf16.mxu1 %vm2187_vm0, %v2186_v0 }
  0x56   :  { %1692 = vmatprep.subr.bf16.mxu1 %v2186_v0  ;;  %p2133_p7 = por %p2132_p6, %p2131_p5 }
  0x58   :  { %p2134_p8 = pnand %p2133_p7, %p2127_p4 }
  0x5c   :  { %1689 = vmatmul.mubr.msk.bf16.vlgmr.msra.gmra.mrb[4].mxu1 %vm166_vm3, %v108_v7 }
  0x5d   :  { %1693 = vmatpush3.bf16.msra.mxu1 %v2338_v8  ;;  %1708 = vmatprep.mubr.msk.bf16.mxu1 %vm2187_vm0, %v2186_v0 }
  0x5e   :  { %1694 = vmatprep.subr.bf16.mxu1 %v2186_v0 }
  0x61   :  { %1695 = vmatpush3.bf16.msra.mxu1 %v2345_v9 }
  0x62   :  { %1696 = vmatprep.subr.bf16.mxu1 %v2186_v0 }
  0x65   :  { %1697 = vmatpush3.bf16.msra.mxu1 %v2348_v10 }
  0x66   :  { %1698 = vmatprep.subr.bf16.mxu1 %v2186_v0 }
  0x69   :  { %1699 = vmatpush3.bf16.msra.mxu1 %v2353_v11 }
  0x6a   :  { %1700 = vmatprep.subr.bf16.mxu1 %v2186_v0 }
  0x6d   :  { %1701 = vmatpush3.bf16.msra.mxu1 %v2357_v12 }
  0x6e   :  { %1702 = vmatprep.subr.bf16.mxu1 %v2186_v0 }
  0x71   :  { %1703 = vmatpush3.bf16.msra.mxu1 %v2361_v13 }
  0x72   :  { %1704 = vmatprep.subr.bf16.mxu1 %v2186_v0 }
  0x75   :  { %1705 = vmatpush3.bf16.msra.mxu1 %v2365_v14 }
  0x76   :  { %1706 = vmatprep.subr.bf16.mxu1 %v2186_v0 }
  0x79   :  { %1707 = vmatpush3.bf16.msra.mxu1 %v2369_v15 }
  0x7a   :  { %1746 = vmatprep.subr.bf16.mxu1 %v2186_v0 }
 0x127   :  { %v160_v16 = vpop.f32.mrb[0].mxu1 }
 0x128   :  { %v1684_v17 = vpop.f32.mrb[1].mxu1 }
 0x129   :  { %v163_v18 = vpop.f32.mrb[2].mxu1 }
 0x12a   :  { %v1685_v19 = vpop.f32.mrb[3].mxu1 }
 0x12f   :  { %v208_v21 = vpop.f32.mrb[4].mxu1 }
 0x130   :  { %v209_v22 = vadd.f32 %v208_v21, %v160_v16  ;;  %v1690_v23 = vpop.f32.mrb[5].mxu1 }
 0x131   :  { %v211_v24 = vpop.f32.mrb[6].mxu1 }
 0x132   :  { %v220_v25 = vadd.f32 %v2376_v20, %v209_v22  ;;  %v1691_v26 = vpop.f32.mrb[7].mxu1 }
 0x134   :  { %v221_v27 = vmul.f32 0.666, %v220_v25 }
 0x136   :  { %1974 = vtanh.f32 %v221_v27 }
 0x140   :  { %v1975_v28 = vpop.eup %1974 }
 0x141   :  { %v223_v29 = vmul.f32 1.7159, %v1975_v28 }
 0x143   :  { %v224_v30 = vpack.c.bf16 %v223_v29, %v223_v29 }
 0x145   :  { %1709 = vmatmul.mubr.bf16.vlgmr.msra.gmra.mrb[8].mxu1 %v224_v30 }
 0x146   :  { %1747 = vmatpush3.bf16.msra.mxu1 %v2316_v1  ;;  %1750 = vmatprep.mubr.msk.bf16.mxu1 %vm2187_vm0, %v2186_v0 }
 0x147   :  { %1748 = vmatprep.subr.bf16.mxu1 %v2186_v0 }
 0x14a   :  { %1749 = vmatpush3.bf16.msra.mxu1 %v2319_v2 }
 0x14b   :  { %1754 = vmatprep.subr.bf16.mxu1 %v2186_v0 }
 0x218   :  { %v313_v32 = vpop.f32.mrb[8].mxu1 }
 0x219   :  { %v314_v33 = vadd.f32 %v2388_v31, %v313_v32  ;;  %v1710_v34 = vpop.f32.mrb[9].mxu1 }
 0x21a   :  { %v316_v35 = vpop.f32.mrb[10].mxu1 }
 0x21b   :  { %1976 = vtanh.f32 %v314_v33  ;;  %321 = vrot.lane.b32.xlu0 %v314_v33, %s2188_s12  ;;  %v1711_v36 = vpop.f32.mrb[11].mxu1 }
 0x225   :  { %v1977_v37 = vpop.eup %1976 }
 0x226   :  { %338 = vrot.lane.b32.xlu0 %v1977_v37, %s2189_s13 }
 0x28d   :  { %v322_v38 = vpop.permute.xlu0 %321 }
 0x28e   :  { %v324_v39 = vadd.f32 %v322_v38, %v314_v33 }
 0x290   :  { %v1544_v40 = vmul.f32 -1.442695, %v324_v39 }
 0x292   :  { %1978 = vpow2.f32 %v1544_v40 }
 0x298   :  { %v339_v45 = vpop.permute.xlu0 %338 }
 0x29c   :  { %v1979_v41 = vpop.eup %1978 }
 0x29d   :  { %v328_v42 = vadd.f32 1.0, %v1979_v41 }
 0x29f   :  { %1980 = vrcp.f32 %v328_v42 }
 0x2a9   :  { %v1981_v43 = vpop.eup %1980 }
 0x2aa   :  { %v331_v44 = vsub.f32 1.0, %v1981_v43  ;;  %v341_v46 = vmul.f32 %v1981_v43, %v339_v45 }
 0x2ac   :  { %333 = vrot.lane.b32.xlu1 %v331_v44, %s2182_s1 }
 0x2b0   :  { %343 = vrot.lane.b32.xlu1 %v341_v46, %s2182_s1 }
 0x31e   :  { %v334_v47 = vpop.permute.xlu1 %333 }
 0x31f   :  { %v336_v48 = vmul.f32 %v1977_v37, %v334_v47  ;;  %v513_v37 = vld [vmem:[#allocation2 + $0x8] sm:$0xf] }
 0x322   :  { %v344_v49 = vpop.permute.xlu1 %343 }
 0x323   :  { %v346_v50 = vadd.f32 %v344_v49, %v336_v48 }
 0x325   :  { %347 = vst.msk [vmem:[#allocation10] sm:$0xff] %vm122_vm2, %v346_v50  ;;  %v350_v51 = vpack.c.bf16 %v346_v50, %v346_v50 }
 0x327   :  { %1717 = vmatmul.mubr.msk.bf16.vlgmr.msra.gmra.mrb[0].mxu0 %vm122_vm2, %v350_v51 }
 0x328   :  { %1721 = vmatpush3.bf16.msra.mxu0 %v2326_v5  ;;  %1722 = vmatprep.mubr.msk.bf16.mxu0 %vm2187_vm0, %v2186_v0 }
 0x329   :  { %1726 = vmatprep.subr.bf16.mxu0 %v2186_v0 }
 0x32f   :  { %1723 = vmatmul.mubr.msk.bf16.vlgmr.msra.gmra.mrb[4].mxu0 %vm166_vm3, %v349_v52 }
 0x330   :  { %1727 = vmatpush3.bf16.msra.mxu0 %v2338_v8  ;;  %1742 = vmatprep.mubr.msk.bf16.mxu0 %vm2187_vm0, %v2186_v0 }
 0x331   :  { %1728 = vmatprep.subr.bf16.mxu0 %v2186_v0 }
 0x334   :  { %1729 = vmatpush3.bf16.msra.mxu0 %v2345_v9 }
 0x335   :  { %1730 = vmatprep.subr.bf16.mxu0 %v2186_v0 }
 0x338   :  { %1731 = vmatpush3.bf16.msra.mxu0 %v2348_v10 }
 0x339   :  { %1732 = vmatprep.subr.bf16.mxu0 %v2186_v0 }
 0x33c   :  { %1733 = vmatpush3.bf16.msra.mxu0 %v2353_v11 }
 0x33d   :  { %1734 = vmatprep.subr.bf16.mxu0 %v2186_v0 }
 0x340   :  { %1735 = vmatpush3.bf16.msra.mxu0 %v2357_v12 }
 0x341   :  { %1736 = vmatprep.subr.bf16.mxu0 %v2186_v0 }
 0x344   :  { %1737 = vmatpush3.bf16.msra.mxu0 %v2361_v13 }
 0x345   :  { %1738 = vmatprep.subr.bf16.mxu0 %v2186_v0 }
 0x348   :  { %1739 = vmatpush3.bf16.msra.mxu0 %v2365_v14 }
 0x349   :  { %1740 = vmatprep.subr.bf16.mxu0 %v2186_v0 }
 0x34c   :  { %1741 = vmatpush3.bf16.msra.mxu0 %v2369_v15 }
 0x34d   :  { %1780 = vmatprep.subr.bf16.mxu0 %v2186_v0 }
 0x3fa   :  { %v388_v53 = vpop.f32.mrb[0].mxu0 }
 0x3fb   :  { %v1718_v54 = vpop.f32.mrb[1].mxu0 }
 0x3fc   :  { %v391_v55 = vpop.f32.mrb[2].mxu0 }
 0x3fd   :  { %v1719_v56 = vpop.f32.mrb[3].mxu0 }
 0x402   :  { %v431_v57 = vpop.f32.mrb[4].mxu0 }
 0x403   :  { %v432_v58 = vadd.f32 %v431_v57, %v388_v53  ;;  %v1724_v59 = vpop.f32.mrb[5].mxu0 }
 0x404   :  { %v434_v60 = vpop.f32.mrb[6].mxu0 }
 0x405   :  { %v437_v61 = vadd.f32 %v2376_v20, %v432_v58  ;;  %v1725_v62 = vpop.f32.mrb[7].mxu0 }
 0x407   :  { %v438_v63 = vmul.f32 0.666, %v437_v61 }
 0x409   :  { %1982 = vtanh.f32 %v438_v63 }
 0x413   :  { %v1983_v3 = vpop.eup %1982 }
 0x414   :  { %v440_v4 = vmul.f32 1.7159, %v1983_v3 }
 0x416   :  { %v441_v6 = vpack.c.bf16 %v440_v4, %v440_v4 }
 0x418   :  { %1743 = vmatmul.mubr.bf16.vlgmr.msra.gmra.mrb[8].mxu0 %v441_v6 }
 0x419   :  { %1781 = vmatpush3.bf16.msra.mxu0 %v2316_v1  ;;  %1784 = vmatprep.mubr.msk.bf16.mxu0 %vm2187_vm0, %v2186_v0 }
 0x41a   :  { %1782 = vmatprep.subr.bf16.mxu0 %v2186_v0 }
 0x41d   :  { %1783 = vmatpush3.bf16.msra.mxu0 %v2319_v2 }
 0x41e   :  { %1788 = vmatprep.subr.bf16.mxu0 %v2186_v0 }
 0x4eb   :  { %v476_v7 = vpop.f32.mrb[8].mxu0 }
 0x4ec   :  { %v477_v16 = vadd.f32 %v2388_v31, %v476_v7  ;;  %v1744_v17 = vpop.f32.mrb[9].mxu0 }
 0x4ed   :  { %v479_v18 = vpop.f32.mrb[10].mxu0 }
 0x4ee   :  { %1984 = vtanh.f32 %v477_v16  ;;  %484 = vrot.lane.b32.xlu0 %v477_v16, %s2188_s12  ;;  %v1745_v19 = vpop.f32.mrb[11].mxu0 }
 0x4f8   :  { %v1985_v21 = vpop.eup %1984 }
 0x4f9   :  { %501 = vrot.lane.b32.xlu1 %v1985_v21, %s2189_s13 }
 0x560   :  { %v485_v22 = vpop.permute.xlu0 %484 }
 0x561   :  { %v487_v23 = vadd.f32 %v485_v22, %v477_v16 }
 0x563   :  { %v1547_v24 = vmul.f32 -1.442695, %v487_v23 }
 0x565   :  { %1986 = vpow2.f32 %v1547_v24 }
 0x56b   :  { %v502_v28 = vpop.permute.xlu1 %501 }
 0x56f   :  { %v1987_v25 = vpop.eup %1986 }
 0x570   :  { %v491_v26 = vadd.f32 1.0, %v1987_v25 }
 0x572   :  { %1988 = vrcp.f32 %v491_v26 }
 0x57c   :  { %v1989_v27 = vpop.eup %1988 }
 0x57d   :  { %v504_v29 = vmul.f32 %v1989_v27, %v502_v28  ;;  %v494_v30 = vsub.f32 1.0, %v1989_v27 }
 0x57f   :  { %496 = vrot.lane.b32.xlu0 %v494_v30, %s2182_s1  ;;  %506 = vrot.lane.b32.xlu1 %v504_v29, %s2182_s1 }
 0x5f1   :  { %v497_v32 = vpop.permute.xlu0 %496  ;;  %v507_v34 = vpop.permute.xlu1 %506 }
 0x5f2   :  { %v499_v33 = vmul.f32 %v1985_v21, %v497_v32  ;;  %v677_v21 = vld [vmem:[#allocation2 + $0xc] sm:$0xf] }
 0x5f4   :  { %v509_v35 = vadd.f32 %v507_v34, %v499_v33 }
 0x5f6   :  { %511 = vst.msk [vmem:[#allocation10 + $0x8] sm:$0xff] %vm122_vm2, %v509_v35  ;;  %v514_v36 = vpack.c.bf16 %v509_v35, %v509_v35 }
 0x5f8   :  { %1751 = vmatmul.mubr.msk.bf16.vlgmr.msra.gmra.mrb[12].mxu1 %vm122_vm2, %v514_v36 }
 0x5f9   :  { %1755 = vmatpush3.bf16.msra.mxu1 %v2326_v5  ;;  %1756 = vmatprep.mubr.msk.bf16.mxu1 %vm2187_vm0, %v2186_v0 }
 0x5fa   :  { %1760 = vmatprep.subr.bf16.mxu1 %v2186_v0 }
 0x600   :  { %1757 = vmatmul.mubr.msk.bf16.vlgmr.msra.gmra.mrb[16].mxu1 %vm166_vm3, %v513_v37 }
 0x601   :  { %1761 = vmatpush3.bf16.msra.mxu1 %v2338_v8  ;;  %1776 = vmatprep.mubr.msk.bf16.mxu1 %vm2187_vm0, %v2186_v0 }
 0x602   :  { %1762 = vmatprep.subr.bf16.mxu1 %v2186_v0 }
 0x605   :  { %1763 = vmatpush3.bf16.msra.mxu1 %v2345_v9 }
 0x606   :  { %1764 = vmatprep.subr.bf16.mxu1 %v2186_v0 }
 0x609   :  { %1765 = vmatpush3.bf16.msra.mxu1 %v2348_v10 }
 0x60a   :  { %1766 = vmatprep.subr.bf16.mxu1 %v2186_v0 }
 0x60d   :  { %1767 = vmatpush3.bf16.msra.mxu1 %v2353_v11 }
 0x60e   :  { %1768 = vmatprep.subr.bf16.mxu1 %v2186_v0 }
 0x611   :  { %1769 = vmatpush3.bf16.msra.mxu1 %v2357_v12 }
 0x612   :  { %1770 = vmatprep.subr.bf16.mxu1 %v2186_v0 }
 0x615   :  { %1771 = vmatpush3.bf16.msra.mxu1 %v2361_v13 }
 0x616   :  { %1772 = vmatprep.subr.bf16.mxu1 %v2186_v0 }
 0x619   :  { %1773 = vmatpush3.bf16.msra.mxu1 %v2365_v14 }
 0x61a   :  { %1774 = vmatprep.subr.bf16.mxu1 %v2186_v0 }
 0x61d   :  { %1775 = vmatpush3.bf16.msra.mxu1 %v2369_v15 }
 0x61e   :  { %1814 = vmatprep.subr.bf16.mxu1 %v2186_v0 }
 0x6cb   :  { %v552_v38 = vpop.f32.mrb[12].mxu1 }
 0x6cc   :  { %v1752_v39 = vpop.f32.mrb[13].mxu1 }
 0x6cd   :  { %v555_v40 = vpop.f32.mrb[14].mxu1 }
 0x6ce   :  { %v1753_v41 = vpop.f32.mrb[15].mxu1 }
 0x6d3   :  { %v595_v42 = vpop.f32.mrb[16].mxu1 }
 0x6d4   :  { %v596_v43 = vadd.f32 %v595_v42, %v552_v38  ;;  %v1758_v44 = vpop.f32.mrb[17].mxu1 }
 0x6d5   :  { %v598_v45 = vpop.f32.mrb[18].mxu1 }
 0x6d6   :  { %v601_v46 = vadd.f32 %v2376_v20, %v596_v43  ;;  %v1759_v47 = vpop.f32.mrb[19].mxu1 }
 0x6d8   :  { %v602_v48 = vmul.f32 0.666, %v601_v46 }
 0x6da   :  { %1990 = vtanh.f32 %v602_v48 }
 0x6e4   :  { %v1991_v49 = vpop.eup %1990 }
 0x6e5   :  { %v604_v50 = vmul.f32 1.7159, %v1991_v49 }
 0x6e7   :  { %v605_v51 = vpack.c.bf16 %v604_v50, %v604_v50 }
 0x6e9   :  { %1777 = vmatmul.mubr.bf16.vlgmr.msra.gmra.mrb[20].mxu1 %v605_v51 }
 0x6ea   :  { %1815 = vmatpush3.bf16.msra.mxu1 %v2316_v1  ;;  %1818 = vmatprep.mubr.msk.bf16.mxu1 %vm2187_vm0, %v2186_v0 }
 0x6eb   :  { %1816 = vmatprep.subr.bf16.mxu1 %v2186_v0 }
 0x6ee   :  { %1817 = vmatpush3.bf16.msra.mxu1 %v2319_v2 }
 0x6ef   :  { %1822 = vmatprep.subr.bf16.mxu1 %v2186_v0 }
 0x7bc   :  { %v640_v52 = vpop.f32.mrb[20].mxu1 }
 0x7bd   :  { %v641_v53 = vadd.f32 %v2388_v31, %v640_v52  ;;  %v1778_v54 = vpop.f32.mrb[21].mxu1 }
 0x7be   :  { %v643_v55 = vpop.f32.mrb[22].mxu1 }
 0x7bf   :  { %1992 = vtanh.f32 %v641_v53  ;;  %648 = vrot.lane.b32.xlu0 %v641_v53, %s2188_s12  ;;  %v1779_v56 = vpop.f32.mrb[23].mxu1 }
 0x7c9   :  { %v1993_v57 = vpop.eup %1992 }
 0x7ca   :  { %665 = vrot.lane.b32.xlu1 %v1993_v57, %s2189_s13 }
 0x831   :  { %v649_v58 = vpop.permute.xlu0 %648 }
 0x832   :  { %v651_v59 = vadd.f32 %v649_v58, %v641_v53 }
 0x834   :  { %v1550_v60 = vmul.f32 -1.442695, %v651_v59 }
 0x836   :  { %1994 = vpow2.f32 %v1550_v60 }
 0x83c   :  { %v666_v3 = vpop.permute.xlu1 %665 }
 0x840   :  { %v1995_v61 = vpop.eup %1994 }
 0x841   :  { %v655_v62 = vadd.f32 1.0, %v1995_v61 }
 0x843   :  { %1996 = vrcp.f32 %v655_v62 }
 0x84d   :  { %v1997_v63 = vpop.eup %1996 }
 0x84e   :  { %v668_v4 = vmul.f32 %v1997_v63, %v666_v3  ;;  %v658_v6 = vsub.f32 1.0, %v1997_v63 }
 0x850   :  { %660 = vrot.lane.b32.xlu0 %v658_v6, %s2182_s1  ;;  %670 = vrot.lane.b32.xlu1 %v668_v4, %s2182_s1 }
 0x8c2   :  { %v661_v7 = vpop.permute.xlu0 %660  ;;  %v671_v17 = vpop.permute.xlu1 %670 }
 0x8c3   :  { %v663_v16 = vmul.f32 %v1993_v57, %v661_v7  ;;  %v841_v57 = vld [vmem:[#allocation2 + $0x10] sm:$0xf] }
 0x8c5   :  { %v673_v18 = vadd.f32 %v671_v17, %v663_v16 }
 0x8c7   :  { %675 = vst.msk [vmem:[#allocation10 + $0x10] sm:$0xff] %vm122_vm2, %v673_v18  ;;  %v678_v19 = vpack.c.bf16 %v673_v18, %v673_v18 }
 0x8c9   :  { %1785 = vmatmul.mubr.msk.bf16.vlgmr.msra.gmra.mrb[12].mxu0 %vm122_vm2, %v678_v19 }
 0x8ca   :  { %1789 = vmatpush3.bf16.msra.mxu0 %v2326_v5  ;;  %1790 = vmatprep.mubr.msk.bf16.mxu0 %vm2187_vm0, %v2186_v0 }
 0x8cb   :  { %1794 = vmatprep.subr.bf16.mxu0 %v2186_v0 }
 0x8d1   :  { %1791 = vmatmul.mubr.msk.bf16.vlgmr.msra.gmra.mrb[16].mxu0 %vm166_vm3, %v677_v21 }
 0x8d2   :  { %1795 = vmatpush3.bf16.msra.mxu0 %v2338_v8  ;;  %1810 = vmatprep.mubr.msk.bf16.mxu0 %vm2187_vm0, %v2186_v0 }
 0x8d3   :  { %1796 = vmatprep.subr.bf16.mxu0 %v2186_v0 }
 0x8d6   :  { %1797 = vmatpush3.bf16.msra.mxu0 %v2345_v9 }
 0x8d7   :  { %1798 = vmatprep.subr.bf16.mxu0 %v2186_v0 }
 0x8da   :  { %1799 = vmatpush3.bf16.msra.mxu0 %v2348_v10 }
 0x8db   :  { %1800 = vmatprep.subr.bf16.mxu0 %v2186_v0 }
 0x8de   :  { %1801 = vmatpush3.bf16.msra.mxu0 %v2353_v11 }
 0x8df   :  { %1802 = vmatprep.subr.bf16.mxu0 %v2186_v0 }
 0x8e2   :  { %1803 = vmatpush3.bf16.msra.mxu0 %v2357_v12 }
 0x8e3   :  { %1804 = vmatprep.subr.bf16.mxu0 %v2186_v0 }
 0x8e6   :  { %1805 = vmatpush3.bf16.msra.mxu0 %v2361_v13 }
 0x8e7   :  { %1806 = vmatprep.subr.bf16.mxu0 %v2186_v0 }
 0x8ea   :  { %1807 = vmatpush3.bf16.msra.mxu0 %v2365_v14 }
 0x8eb   :  { %1808 = vmatprep.subr.bf16.mxu0 %v2186_v0 }
 0x8ee   :  { %1809 = vmatpush3.bf16.msra.mxu0 %v2369_v15 }
 0x8ef   :  { %1848 = vmatprep.subr.bf16.mxu0 %v2186_v0 }
 0x99c   :  { %v716_v22 = vpop.f32.mrb[12].mxu0 }
 0x99d   :  { %v1786_v23 = vpop.f32.mrb[13].mxu0 }
 0x99e   :  { %v719_v24 = vpop.f32.mrb[14].mxu0 }
 0x99f   :  { %v1787_v25 = vpop.f32.mrb[15].mxu0 }
 0x9a4   :  { %v759_v26 = vpop.f32.mrb[16].mxu0 }
 0x9a5   :  { %v760_v27 = vadd.f32 %v759_v26, %v716_v22  ;;  %v1792_v28 = vpop.f32.mrb[17].mxu0 }
 0x9a6   :  { %v762_v29 = vpop.f32.mrb[18].mxu0 }
 0x9a7   :  { %v765_v30 = vadd.f32 %v2376_v20, %v760_v27  ;;  %v1793_v32 = vpop.f32.mrb[19].mxu0 }
 0x9a9   :  { %v766_v33 = vmul.f32 0.666, %v765_v30 }
 0x9ab   :  { %1998 = vtanh.f32 %v766_v33 }
 0x9b5   :  { %v1999_v34 = vpop.eup %1998 }
 0x9b6   :  { %v768_v35 = vmul.f32 1.7159, %v1999_v34 }
 0x9b8   :  { %v769_v36 = vpack.c.bf16 %v768_v35, %v768_v35 }
 0x9ba   :  { %1811 = vmatmul.mubr.bf16.vlgmr.msra.gmra.mrb[20].mxu0 %v769_v36 }
 0x9bb   :  { %1849 = vmatpush3.bf16.msra.mxu0 %v2316_v1  ;;  %1852 = vmatprep.mubr.msk.bf16.mxu0 %vm2187_vm0, %v2186_v0 }
 0x9bc   :  { %1850 = vmatprep.subr.bf16.mxu0 %v2186_v0 }
 0x9bf   :  { %1851 = vmatpush3.bf16.msra.mxu0 %v2319_v2 }
 0x9c0   :  { %1856 = vmatprep.subr.bf16.mxu0 %v2186_v0 }
 0xa8d   :  { %v804_v37 = vpop.f32.mrb[20].mxu0 }
 0xa8e   :  { %v805_v38 = vadd.f32 %v2388_v31, %v804_v37  ;;  %v1812_v39 = vpop.f32.mrb[21].mxu0 }
 0xa8f   :  { %v807_v40 = vpop.f32.mrb[22].mxu0 }
 0xa90   :  { %2000 = vtanh.f32 %v805_v38  ;;  %812 = vrot.lane.b32.xlu0 %v805_v38, %s2188_s12  ;;  %v1813_v41 = vpop.f32.mrb[23].mxu0 }
 0xa9a   :  { %v2001_v42 = vpop.eup %2000 }
 0xa9b   :  { %829 = vrot.lane.b32.xlu1 %v2001_v42, %s2189_s13 }
 0xb02   :  { %v813_v43 = vpop.permute.xlu0 %812 }
 0xb03   :  { %v815_v44 = vadd.f32 %v813_v43, %v805_v38 }
 0xb05   :  { %v1553_v45 = vmul.f32 -1.442695, %v815_v44 }
 0xb07   :  { %2002 = vpow2.f32 %v1553_v45 }
 0xb0d   :  { %v830_v49 = vpop.permute.xlu1 %829 }
 0xb11   :  { %v2003_v46 = vpop.eup %2002 }
 0xb12   :  { %v819_v47 = vadd.f32 1.0, %v2003_v46 }
 0xb14   :  { %2004 = vrcp.f32 %v819_v47 }
 0xb1e   :  { %v2005_v48 = vpop.eup %2004 }
 0xb1f   :  { %v832_v50 = vmul.f32 %v2005_v48, %v830_v49  ;;  %v822_v51 = vsub.f32 1.0, %v2005_v48 }
 0xb21   :  { %824 = vrot.lane.b32.xlu0 %v822_v51, %s2182_s1  ;;  %834 = vrot.lane.b32.xlu1 %v832_v50, %s2182_s1 }
 0xb93   :  { %v825_v52 = vpop.permute.xlu0 %824  ;;  %v835_v54 = vpop.permute.xlu1 %834 }
 0xb94   :  { %v827_v53 = vmul.f32 %v2001_v42, %v825_v52  ;;  %v1005_v42 = vld [vmem:[#allocation2 + $0x14] sm:$0xf] }
 0xb96   :  { %v837_v55 = vadd.f32 %v835_v54, %v827_v53 }
 0xb98   :  { %839 = vst.msk [vmem:[#allocation10 + $0x18] sm:$0xff] %vm122_vm2, %v837_v55  ;;  %v842_v56 = vpack.c.bf16 %v837_v55, %v837_v55 }
 0xb9a   :  { %1819 = vmatmul.mubr.msk.bf16.vlgmr.msra.gmra.mrb[24].mxu1 %vm122_vm2, %v842_v56 }
 0xb9b   :  { %1823 = vmatpush3.bf16.msra.mxu1 %v2326_v5  ;;  %1824 = vmatprep.mubr.msk.bf16.mxu1 %vm2187_vm0, %v2186_v0 }
 0xb9c   :  { %1828 = vmatprep.subr.bf16.mxu1 %v2186_v0 }
 0xba2   :  { %1825 = vmatmul.mubr.msk.bf16.vlgmr.msra.gmra.mrb[28].mxu1 %vm166_vm3, %v841_v57 }
 0xba3   :  { %1829 = vmatpush3.bf16.msra.mxu1 %v2338_v8  ;;  %1844 = vmatprep.mubr.msk.bf16.mxu1 %vm2187_vm0, %v2186_v0 }
 0xba4   :  { %1830 = vmatprep.subr.bf16.mxu1 %v2186_v0 }
 0xba7   :  { %1831 = vmatpush3.bf16.msra.mxu1 %v2345_v9 }
 0xba8   :  { %1832 = vmatprep.subr.bf16.mxu1 %v2186_v0 }
 0xbab   :  { %1833 = vmatpush3.bf16.msra.mxu1 %v2348_v10 }
 0xbac   :  { %1834 = vmatprep.subr.bf16.mxu1 %v2186_v0 }
 0xbaf   :  { %1835 = vmatpush3.bf16.msra.mxu1 %v2353_v11 }
 0xbb0   :  { %1836 = vmatprep.subr.bf16.mxu1 %v2186_v0 }
 0xbb3   :  { %1837 = vmatpush3.bf16.msra.mxu1 %v2357_v12 }
 0xbb4   :  { %1838 = vmatprep.subr.bf16.mxu1 %v2186_v0 }
 0xbb7   :  { %1839 = vmatpush3.bf16.msra.mxu1 %v2361_v13 }
 0xbb8   :  { %1840 = vmatprep.subr.bf16.mxu1 %v2186_v0 }
 0xbbb   :  { %1841 = vmatpush3.bf16.msra.mxu1 %v2365_v14 }
 0xbbc   :  { %1842 = vmatprep.subr.bf16.mxu1 %v2186_v0 }
 0xbbf   :  { %1843 = vmatpush3.bf16.msra.mxu1 %v2369_v15 }
 0xbc0   :  { %1882 = vmatprep.subr.bf16.mxu1 %v2186_v0 }
 0xc6d   :  { %v880_v58 = vpop.f32.mrb[24].mxu1 }
 0xc6e   :  { %v1820_v59 = vpop.f32.mrb[25].mxu1 }
 0xc6f   :  { %v883_v60 = vpop.f32.mrb[26].mxu1 }
 0xc70   :  { %v1821_v61 = vpop.f32.mrb[27].mxu1 }
 0xc75   :  { %v923_v62 = vpop.f32.mrb[28].mxu1 }
 0xc76   :  { %v924_v63 = vadd.f32 %v923_v62, %v880_v58  ;;  %v1826_v3 = vpop.f32.mrb[29].mxu1 }
 0xc77   :  { %v926_v4 = vpop.f32.mrb[30].mxu1 }
 0xc78   :  { %v929_v6 = vadd.f32 %v2376_v20, %v924_v63  ;;  %v1827_v7 = vpop.f32.mrb[31].mxu1 }
 0xc7a   :  { %v930_v16 = vmul.f32 0.666, %v929_v6 }
 0xc7c   :  { %2006 = vtanh.f32 %v930_v16 }
 0xc86   :  { %v2007_v17 = vpop.eup %2006 }
 0xc87   :  { %v932_v18 = vmul.f32 1.7159, %v2007_v17 }
 0xc89   :  { %v933_v19 = vpack.c.bf16 %v932_v18, %v932_v18 }
 0xc8b   :  { %1845 = vmatmul.mubr.bf16.vlgmr.msra.gmra.mrb[32].mxu1 %v933_v19 }
 0xc8c   :  { %1883 = vmatpush3.bf16.msra.mxu1 %v2316_v1  ;;  %1886 = vmatprep.mubr.msk.bf16.mxu1 %vm2187_vm0, %v2186_v0 }
 0xc8d   :  { %1884 = vmatprep.subr.bf16.mxu1 %v2186_v0 }
 0xc90   :  { %1885 = vmatpush3.bf16.msra.mxu1 %v2319_v2 }
 0xc91   :  { %1890 = vmatprep.subr.bf16.mxu1 %v2186_v0 }
 0xd5e   :  { %v968_v21 = vpop.f32.mrb[32].mxu1 }
 0xd5f   :  { %v969_v22 = vadd.f32 %v2388_v31, %v968_v21  ;;  %v1846_v23 = vpop.f32.mrb[33].mxu1 }
 0xd60   :  { %v971_v24 = vpop.f32.mrb[34].mxu1 }
 0xd61   :  { %2008 = vtanh.f32 %v969_v22  ;;  %976 = vrot.lane.b32.xlu0 %v969_v22, %s2188_s12  ;;  %v1847_v25 = vpop.f32.mrb[35].mxu1  ;;  %v1169_v24 = vld [vmem:[#allocation2 + $0x18] sm:$0xf] }
 0xd6b   :  { %v2009_v26 = vpop.eup %2008 }
 0xd6c   :  { %993 = vrot.lane.b32.xlu1 %v2009_v26, %s2189_s13 }
 0xdd3   :  { %v977_v27 = vpop.permute.xlu0 %976 }
 0xdd4   :  { %v979_v28 = vadd.f32 %v977_v27, %v969_v22 }
 0xdd6   :  { %v1556_v29 = vmul.f32 -1.442695, %v979_v28 }
 0xdd8   :  { %2010 = vpow2.f32 %v1556_v29 }
 0xdde   :  { %v994_v34 = vpop.permute.xlu1 %993 }
 0xde2   :  { %v2011_v30 = vpop.eup %2010 }
 0xde3   :  { %v983_v32 = vadd.f32 1.0, %v2011_v30 }
 0xde5   :  { %2012 = vrcp.f32 %v983_v32 }
 0xdef   :  { %v2013_v33 = vpop.eup %2012 }
 0xdf0   :  { %v996_v35 = vmul.f32 %v2013_v33, %v994_v34  ;;  %v986_v36 = vsub.f32 1.0, %v2013_v33 }
 0xdf2   :  { %988 = vrot.lane.b32.xlu0 %v986_v36, %s2182_s1  ;;  %998 = vrot.lane.b32.xlu1 %v996_v35, %s2182_s1 }
 0xe64   :  { %v989_v37 = vpop.permute.xlu0 %988  ;;  %v999_v39 = vpop.permute.xlu1 %998 }
 0xe65   :  { %v991_v38 = vmul.f32 %v2009_v26, %v989_v37 }
 0xe67   :  { %v1001_v40 = vadd.f32 %v999_v39, %v991_v38 }
 0xe69   :  { %1003 = vst.msk [vmem:[#allocation10 + $0x20] sm:$0xff] %vm122_vm2, %v1001_v40  ;;  %v1006_v41 = vpack.c.bf16 %v1001_v40, %v1001_v40 }
 0xe6b   :  { %1853 = vmatmul.mubr.msk.bf16.vlgmr.msra.gmra.mrb[24].mxu0 %vm122_vm2, %v1006_v41 }
 0xe6c   :  { %1857 = vmatpush3.bf16.msra.mxu0 %v2326_v5  ;;  %1858 = vmatprep.mubr.msk.bf16.mxu0 %vm2187_vm0, %v2186_v0 }
 0xe6d   :  { %1862 = vmatprep.subr.bf16.mxu0 %v2186_v0 }
 0xe73   :  { %1859 = vmatmul.mubr.msk.bf16.vlgmr.msra.gmra.mrb[28].mxu0 %vm166_vm3, %v1005_v42 }
 0xe74   :  { %1863 = vmatpush3.bf16.msra.mxu0 %v2338_v8  ;;  %1878 = vmatprep.mubr.msk.bf16.mxu0 %vm2187_vm0, %v2186_v0 }
 0xe75   :  { %1864 = vmatprep.subr.bf16.mxu0 %v2186_v0 }
 0xe78   :  { %1865 = vmatpush3.bf16.msra.mxu0 %v2345_v9 }
 0xe79   :  { %1866 = vmatprep.subr.bf16.mxu0 %v2186_v0 }
 0xe7c   :  { %1867 = vmatpush3.bf16.msra.mxu0 %v2348_v10 }
 0xe7d   :  { %1868 = vmatprep.subr.bf16.mxu0 %v2186_v0 }
 0xe80   :  { %1869 = vmatpush3.bf16.msra.mxu0 %v2353_v11 }
 0xe81   :  { %1870 = vmatprep.subr.bf16.mxu0 %v2186_v0 }
 0xe84   :  { %1871 = vmatpush3.bf16.msra.mxu0 %v2357_v12 }
 0xe85   :  { %1872 = vmatprep.subr.bf16.mxu0 %v2186_v0 }
 0xe88   :  { %1873 = vmatpush3.bf16.msra.mxu0 %v2361_v13 }
 0xe89   :  { %1874 = vmatprep.subr.bf16.mxu0 %v2186_v0 }
 0xe8c   :  { %1875 = vmatpush3.bf16.msra.mxu0 %v2365_v14 }
 0xe8d   :  { %1876 = vmatprep.subr.bf16.mxu0 %v2186_v0 }
 0xe90   :  { %1877 = vmatpush3.bf16.msra.mxu0 %v2369_v15 }
 0xe91   :  { %1916 = vmatprep.subr.bf16.mxu0 %v2186_v0 }
 0xf3e   :  { %v1044_v43 = vpop.f32.mrb[24].mxu0 }
 0xf3f   :  { %v1854_v44 = vpop.f32.mrb[25].mxu0 }
 0xf40   :  { %v1047_v45 = vpop.f32.mrb[26].mxu0 }
 0xf41   :  { %v1855_v46 = vpop.f32.mrb[27].mxu0 }
 0xf46   :  { %v1087_v47 = vpop.f32.mrb[28].mxu0 }
 0xf47   :  { %v1088_v48 = vadd.f32 %v1087_v47, %v1044_v43  ;;  %v1860_v49 = vpop.f32.mrb[29].mxu0 }
 0xf48   :  { %v1090_v50 = vpop.f32.mrb[30].mxu0 }
 0xf49   :  { %v1093_v51 = vadd.f32 %v2376_v20, %v1088_v48  ;;  %v1861_v52 = vpop.f32.mrb[31].mxu0 }
 0xf4b   :  { %v1094_v53 = vmul.f32 0.666, %v1093_v51 }
 0xf4d   :  { %2014 = vtanh.f32 %v1094_v53 }
 0xf57   :  { %v2015_v54 = vpop.eup %2014 }
 0xf58   :  { %v1096_v55 = vmul.f32 1.7159, %v2015_v54 }
 0xf5a   :  { %v1097_v56 = vpack.c.bf16 %v1096_v55, %v1096_v55 }
 0xf5c   :  { %1879 = vmatmul.mubr.bf16.vlgmr.msra.gmra.mrb[32].mxu0 %v1097_v56 }
 0xf5d   :  { %1917 = vmatpush3.bf16.msra.mxu0 %v2316_v1  ;;  %1920 = vmatprep.mubr.msk.bf16.mxu0 %vm2187_vm0, %v2186_v0 }
 0xf5e   :  { %1918 = vmatprep.subr.bf16.mxu0 %v2186_v0 }
 0xf61   :  { %1919 = vmatpush3.bf16.msra.mxu0 %v2319_v2 }
 0xf62   :  { %1924 = vmatprep.subr.bf16.mxu0 %v2186_v0 }
0x102f   :  { %v1132_v57 = vpop.f32.mrb[32].mxu0 }
0x1030   :  { %v1133_v58 = vadd.f32 %v2388_v31, %v1132_v57  ;;  %v1880_v59 = vpop.f32.mrb[33].mxu0 }
0x1031   :  { %v1135_v60 = vpop.f32.mrb[34].mxu0 }
0x1032   :  { %2016 = vtanh.f32 %v1133_v58  ;;  %1140 = vrot.lane.b32.xlu0 %v1133_v58, %s2188_s12  ;;  %v1881_v61 = vpop.f32.mrb[35].mxu0  ;;  %v1333_v60 = vld [vmem:[#allocation2 + $0x1c] sm:$0xf] }
0x103c   :  { %v2017_v62 = vpop.eup %2016 }
0x103d   :  { %1157 = vrot.lane.b32.xlu1 %v2017_v62, %s2189_s13 }
0x10a4   :  { %v1141_v1 = vpop.permute.xlu0 %1140 }
0x10a5   :  { %v1143_v63 = vadd.f32 %v1141_v1, %v1133_v58 }
0x10a7   :  { %v1559_v3 = vmul.f32 -1.442695, %v1143_v63 }
0x10a9   :  { %2018 = vpow2.f32 %v1559_v3 }
0x10af   :  { %v1158_v7 = vpop.permute.xlu1 %1157 }
0x10b3   :  { %v2019_v4 = vpop.eup %2018 }
0x10b4   :  { %v1147_v2 = vadd.f32 1.0, %v2019_v4 }
0x10b6   :  { %2020 = vrcp.f32 %v1147_v2 }
0x10c0   :  { %v2021_v6 = vpop.eup %2020 }
0x10c1   :  { %v1160_v16 = vmul.f32 %v2021_v6, %v1158_v7  ;;  %v1150_v17 = vsub.f32 1.0, %v2021_v6 }
0x10c3   :  { %1152 = vrot.lane.b32.xlu0 %v1150_v17, %s2182_s1  ;;  %1162 = vrot.lane.b32.xlu1 %v1160_v16, %s2182_s1 }
0x1135   :  { %v1153_v18 = vpop.permute.xlu0 %1152  ;;  %v1163_v21 = vpop.permute.xlu1 %1162 }
0x1136   :  { %v1155_v19 = vmul.f32 %v2017_v62, %v1153_v18 }
0x1138   :  { %v1165_v22 = vadd.f32 %v1163_v21, %v1155_v19 }
0x113a   :  { %1167 = vst.msk [vmem:[#allocation10 + $0x28] sm:$0xff] %vm122_vm2, %v1165_v22  ;;  %v1170_v23 = vpack.c.bf16 %v1165_v22, %v1165_v22 }
0x113c   :  { %1887 = vmatmul.mubr.msk.bf16.vlgmr.msra.gmra.mrb[36].mxu1 %vm122_vm2, %v1170_v23 }
0x113d   :  { %1891 = vmatpush3.bf16.msra.mxu1 %v2326_v5  ;;  %1892 = vmatprep.mubr.msk.bf16.mxu1 %vm2187_vm0, %v2186_v0 }
0x113e   :  { %1896 = vmatprep.subr.bf16.mxu1 %v2186_v0 }
0x1144   :  { %1893 = vmatmul.mubr.msk.bf16.vlgmr.msra.gmra.mrb[40].mxu1 %vm166_vm3, %v1169_v24 }
0x1145   :  { %1897 = vmatpush3.bf16.msra.mxu1 %v2338_v8  ;;  %1912 = vmatprep.mubr.msk.bf16.mxu1 %vm2187_vm0, %v2186_v0 }
0x1146   :  { %1898 = vmatprep.subr.bf16.mxu1 %v2186_v0 }
0x1149   :  { %1899 = vmatpush3.bf16.msra.mxu1 %v2345_v9 }
0x114a   :  { %1900 = vmatprep.subr.bf16.mxu1 %v2186_v0 }
0x114d   :  { %1901 = vmatpush3.bf16.msra.mxu1 %v2348_v10 }
0x114e   :  { %1902 = vmatprep.subr.bf16.mxu1 %v2186_v0 }
0x1151   :  { %1903 = vmatpush3.bf16.msra.mxu1 %v2353_v11 }
0x1152   :  { %1904 = vmatprep.subr.bf16.mxu1 %v2186_v0 }
0x1155   :  { %1905 = vmatpush3.bf16.msra.mxu1 %v2357_v12 }
0x1156   :  { %1906 = vmatprep.subr.bf16.mxu1 %v2186_v0 }
0x1159   :  { %1907 = vmatpush3.bf16.msra.mxu1 %v2361_v13 }
0x115a   :  { %1908 = vmatprep.subr.bf16.mxu1 %v2186_v0 }
0x115d   :  { %1909 = vmatpush3.bf16.msra.mxu1 %v2365_v14 }
0x115e   :  { %1910 = vmatprep.subr.bf16.mxu1 %v2186_v0 }
0x1161   :  { %1911 = vmatpush3.bf16.msra.mxu1 %v2369_v15 }
0x120f   :  { %v1208_v25 = vpop.f32.mrb[36].mxu1 }
0x1210   :  { %v1888_v26 = vpop.f32.mrb[37].mxu1 }
0x1211   :  { %v1211_v27 = vpop.f32.mrb[38].mxu1 }
0x1212   :  { %v1889_v28 = vpop.f32.mrb[39].mxu1 }
0x1217   :  { %v1251_v29 = vpop.f32.mrb[40].mxu1 }
0x1218   :  { %v1252_v30 = vadd.f32 %v1251_v29, %v1208_v25  ;;  %v1894_v32 = vpop.f32.mrb[41].mxu1 }
0x1219   :  { %v1254_v33 = vpop.f32.mrb[42].mxu1 }
0x121a   :  { %v1257_v34 = vadd.f32 %v2376_v20, %v1252_v30  ;;  %v1895_v35 = vpop.f32.mrb[43].mxu1 }
0x121c   :  { %v1258_v36 = vmul.f32 0.666, %v1257_v34 }
0x121e   :  { %2022 = vtanh.f32 %v1258_v36 }
0x1228   :  { %v2023_v37 = vpop.eup %2022 }
0x1229   :  { %v1260_v38 = vmul.f32 1.7159, %v2023_v37 }
0x122b   :  { %v1261_v39 = vpack.c.bf16 %v1260_v38, %v1260_v38 }
0x122d   :  { %1913 = vmatmul.mubr.bf16.vlgmr.msra.gmra.mrb[44].mxu1 %v1261_v39 }
0x1300   :  { %v1296_v40 = vpop.f32.mrb[44].mxu1 }
0x1301   :  { %v1297_v41 = vadd.f32 %v2388_v31, %v1296_v40  ;;  %v1914_v42 = vpop.f32.mrb[45].mxu1 }
0x1302   :  { %v1299_v43 = vpop.f32.mrb[46].mxu1 }
0x1303   :  { %2024 = vtanh.f32 %v1297_v41  ;;  %1304 = vrot.lane.b32.xlu0 %v1297_v41, %s2188_s12  ;;  %v1915_v44 = vpop.f32.mrb[47].mxu1 }
0x130d   :  { %v2025_v45 = vpop.eup %2024 }
0x130e   :  { %1321 = vrot.lane.b32.xlu1 %v2025_v45, %s2189_s13 }
0x1375   :  { %v1305_v46 = vpop.permute.xlu0 %1304 }
0x1376   :  { %v1307_v47 = vadd.f32 %v1305_v46, %v1297_v41 }
0x1378   :  { %v1562_v48 = vmul.f32 -1.442695, %v1307_v47 }
0x137a   :  { %2026 = vpow2.f32 %v1562_v48 }
0x1380   :  { %v1322_v52 = vpop.permute.xlu1 %1321 }
0x1384   :  { %v2027_v49 = vpop.eup %2026 }
0x1385   :  { %v1311_v50 = vadd.f32 1.0, %v2027_v49 }
0x1387   :  { %2028 = vrcp.f32 %v1311_v50 }
0x1391   :  { %v2029_v51 = vpop.eup %2028 }
0x1392   :  { %v1324_v53 = vmul.f32 %v2029_v51, %v1322_v52  ;;  %v1314_v54 = vsub.f32 1.0, %v2029_v51 }
0x1394   :  { %1316 = vrot.lane.b32.xlu0 %v1314_v54, %s2182_s1  ;;  %1326 = vrot.lane.b32.xlu1 %v1324_v53, %s2182_s1 }
0x1406   :  { %v1317_v55 = vpop.permute.xlu0 %1316  ;;  %v1327_v57 = vpop.permute.xlu1 %1326 }
0x1407   :  { %v1319_v56 = vmul.f32 %v2025_v45, %v1317_v55 }
0x1409   :  { %v1329_v58 = vadd.f32 %v1327_v57, %v1319_v56 }
0x140b   :  { %1331 = vst.msk [vmem:[#allocation10 + $0x30] sm:$0xff] %vm122_vm2, %v1329_v58  ;;  %v1334_v59 = vpack.c.bf16 %v1329_v58, %v1329_v58 }
0x140d   :  { %1921 = vmatmul.mubr.msk.bf16.vlgmr.msra.gmra.mrb[36].mxu0 %vm122_vm2, %v1334_v59 }
0x140e   :  { %1925 = vmatpush3.bf16.msra.mxu0 %v2326_v5  ;;  %1926 = vmatprep.mubr.msk.bf16.mxu0 %vm2187_vm0, %v2186_v0 }
0x140f   :  { %1930 = vmatprep.subr.bf16.mxu0 %v2186_v0 }
0x1415   :  { %1927 = vmatmul.mubr.msk.bf16.vlgmr.msra.gmra.mrb[40].mxu0 %vm166_vm3, %v1333_v60 }
0x1416   :  { %1931 = vmatpush3.bf16.msra.mxu0 %v2338_v8  ;;  %1946 = vmatprep.mubr.msk.bf16.mxu0 %vm2187_vm0, %v2186_v0 }
0x1417   :  { %1932 = vmatprep.subr.bf16.mxu0 %v2186_v0 }
0x141a   :  { %1933 = vmatpush3.bf16.msra.mxu0 %v2345_v9 }
0x141b   :  { %1934 = vmatprep.subr.bf16.mxu0 %v2186_v0 }
0x141e   :  { %1935 = vmatpush3.bf16.msra.mxu0 %v2348_v10 }
0x141f   :  { %1936 = vmatprep.subr.bf16.mxu0 %v2186_v0 }
0x1422   :  { %1937 = vmatpush3.bf16.msra.mxu0 %v2353_v11 }
0x1423   :  { %1938 = vmatprep.subr.bf16.mxu0 %v2186_v0 }
0x1426   :  { %1939 = vmatpush3.bf16.msra.mxu0 %v2357_v12 }
0x1427   :  { %1940 = vmatprep.subr.bf16.mxu0 %v2186_v0 }
0x142a   :  { %1941 = vmatpush3.bf16.msra.mxu0 %v2361_v13 }
0x142b   :  { %1942 = vmatprep.subr.bf16.mxu0 %v2186_v0 }
0x142e   :  { %1943 = vmatpush3.bf16.msra.mxu0 %v2365_v14 }
0x142f   :  { %1944 = vmatprep.subr.bf16.mxu0 %v2186_v0 }
0x1432   :  { %1945 = vmatpush3.bf16.msra.mxu0 %v2369_v15 }
0x14e0   :  { %v1372_v5 = vpop.f32.mrb[36].mxu0 }
0x14e1   :  { %v1922_v8 = vpop.f32.mrb[37].mxu0 }
0x14e2   :  { %v1375_v9 = vpop.f32.mrb[38].mxu0 }
0x14e3   :  { %v1923_v10 = vpop.f32.mrb[39].mxu0 }
0x14e8   :  { %v1415_v11 = vpop.f32.mrb[40].mxu0 }
0x14e9   :  { %v1416_v61 = vadd.f32 %v1415_v11, %v1372_v5  ;;  %v1928_v62 = vpop.f32.mrb[41].mxu0 }
0x14ea   :  { %v1418_v12 = vpop.f32.mrb[42].mxu0 }
0x14eb   :  { %v1421_v1 = vadd.f32 %v2376_v20, %v1416_v61  ;;  %v1929_v63 = vpop.f32.mrb[43].mxu0 }
0x14ed   :  { %v1422_v13 = vmul.f32 0.666, %v1421_v1 }
0x14ef   :  { %2030 = vtanh.f32 %v1422_v13 }
0x14f9   :  { %v2031_v3 = vpop.eup %2030 }
0x14fa   :  { %v1424_v4 = vmul.f32 1.7159, %v2031_v3 }
0x14fc   :  { %v1425_v14 = vpack.c.bf16 %v1424_v4, %v1424_v4 }
0x14fe   :  { %1947 = vmatmul.mubr.bf16.vlgmr.msra.gmra.mrb[44].mxu0 %v1425_v14 }
0x15d1   :  { %v1460_v0 = vpop.f32.mrb[44].mxu0 }
0x15d2   :  { %v1461_v15 = vadd.f32 %v2388_v31, %v1460_v0  ;;  %v1948_v2 = vpop.f32.mrb[45].mxu0 }
0x15d3   :  { %v1463_v6 = vpop.f32.mrb[46].mxu0 }
0x15d4   :  { %2032 = vtanh.f32 %v1461_v15  ;;  %1468 = vrot.lane.b32.xlu0 %v1461_v15, %s2188_s12  ;;  %v1949_v7 = vpop.f32.mrb[47].mxu0 }
0x15de   :  { %v2033_v16 = vpop.eup %2032 }
0x15df   :  { %1485 = vrot.lane.b32.xlu1 %v2033_v16, %s2189_s13 }
0x1646   :  { %v1469_v20 = vpop.permute.xlu0 %1468 }
0x1647   :  { %v1471_v17 = vadd.f32 %v1469_v20, %v1461_v15 }
0x1649   :  { %v1565_v18 = vmul.f32 -1.442695, %v1471_v17 }
0x164b   :  { %2034 = vpow2.f32 %v1565_v18 }
0x1651   :  { %v1486_v23 = vpop.permute.xlu1 %1485 }
0x1655   :  { %v2035_v19 = vpop.eup %2034 }
0x1656   :  { %v1475_v21 = vadd.f32 1.0, %v2035_v19 }
0x1658   :  { %2036 = vrcp.f32 %v1475_v21 }
0x1662   :  { %v2037_v22 = vpop.eup %2036 }
0x1663   :  { %v1488_v24 = vmul.f32 %v2037_v22, %v1486_v23  ;;  %v1478_v31 = vsub.f32 1.0, %v2037_v22 }
0x1665   :  { %1480 = vrot.lane.b32.xlu0 %v1478_v31, %s2182_s1  ;;  %1490 = vrot.lane.b32.xlu1 %v1488_v24, %s2182_s1 }
0x16d7   :  { %v1481_v25 = vpop.permute.xlu0 %1480  ;;  %v1491_v27 = vpop.permute.xlu1 %1490 }
0x16d8   :  { %v1483_v26 = vmul.f32 %v2033_v16, %v1481_v25 }
0x16da   :  { %v1493_v28 = vadd.f32 %v1491_v27, %v1483_v26 }
0x16dc   :  { %1495 = vst.msk [vmem:[#allocation10 + $0x38] sm:$0xff] %vm122_vm2, %v1493_v28  ;;  %1496 = vst.msk [vmem:[#allocation11] sm:$0xff] %vm122_vm2, %v1493_v28 }
0x16dd   :  { %2137 = shalt.err (!%p2134_p8)
}
0x16de   :  { %s2138_s19 = scalar_lea.hbm %s2680_s7, 1024 }
0x16df   :  { %p2139_p9 = scmp.ne.s32.totalorder %s2680_s7, %s2138_s19  ;;  %p2142_p10 = scmp.lt.u32.totalorder %s2138_s19, %s2680_s7 }
0x16e1   :  { %p2144_p11 = pnand %p2142_p10, %p2139_p9 }
0x16e3   :  { %2147 = shalt.err (!%p2144_p11)
}
0x16e4   :  { %s2192_s22 = smov 128   ;;  %s2193_s23 = smov 8  }
0x16e5   :  { %1508 = dma.vmem_to_hbm [thread:$0]  %s1503_s14, 1024, %s2680_s7, [#allocation4], %s2192_s22, %s2192_s22, %s2193_s23  }
0x16e6   :  { %s2148_s26 = scalar_lea.vmem %s2640_s16, 128  ;;  %p2153_p13 = scmp.lt.s32.totalorder %s2640_s16, %s2640_s16 }
0x16e7   :  { %p2149_p12 = scmp.ne.s32.totalorder %s2640_s16, %s2148_s26  ;;  %p2154_p0 = scmp.lt.s32.totalorder %s2148_s26, %s2148_s26 }
0x16e9   :  { %p2155_p1 = por %p2154_p0, %p2153_p13 }
0x16eb   :  { %p2156_p2 = pnand %p2155_p1, %p2149_p12 }
0x16ed   :  { %2159 = shalt.err (!%p2156_p2)
}
0x16ee   :  { %s2160_s3 = scalar_lea.hbm %s2681_s8, 128 }
0x16ef   :  { %p2161_p3 = scmp.ne.s32.totalorder %s2681_s8, %s2160_s3  ;;  %p2164_p4 = scmp.lt.u32.totalorder %s2160_s3, %s2681_s8 }
0x16f1   :  { %p2166_p5 = pnand %p2164_p4, %p2161_p3 }
0x16f3   :  { %2169 = shalt.err (!%p2166_p5)
}
0x16f4   :  { %1518 = dma.vmem_to_hbm [thread:$0]  %s2640_s16, 128, %s2681_s8, [#allocation12]  }
0x16f5   :  { %2176 = dma.done.wait [#allocation4], 1024  }
0x16f6   :  { %2177 = vsyncadd [#allocation4], 4294966272 }
0x16f7   :  { %2178 = dma.done.wait [#allocation12], 128  }
0x16f8   :  { %2179 = vsyncadd [#allocation12], 4294967168 }
0x16f9   :  { %1525 = vsyncpa [#allocation3], 1 }
0x16fa   :  { %1526 = vsyncpa [#allocation6], 1 }
0x16fb   :  { %1527 = vsyncpa [#allocation9], 1 }
0x16fc   :  { %1528 = vsyncpa [#allocation4], 1 }
0x16fd   :  { %1529 = vsyncpa [#allocation12], 1 }

</bundles_post_ra>
